<compile_context>
chip_gen: v5e
topology: v5e:2x2
jax: 0.10.0
libtpu: 0.0.40
codegen_flags: <defaults>
</compile_context>

<pallas_src>
import math
import functools

import jax
import jax.numpy as jnp
from jax.experimental import pallas as pl
from jax.experimental.pallas import tpu as pltpu


# ----------------------------------------------------------------------------
# VMEM budget (generation-aware)
# ----------------------------------------------------------------------------
def _vmem_limit_bytes():
    cap = 128 * 1024 * 1024
    try:
        info = pltpu.get_tpu_info()
        cap = int(getattr(info, "vmem_capacity_bytes", cap))
    except Exception:
        pass
    # ~25% headroom for Mosaic-internal scratch; never ask for more than 100 MiB.
    return int(min(cap * 3 // 4, 100 * 1024 * 1024))


def _round_up(x, m):
    return ((x + m - 1) // m) * m


# ----------------------------------------------------------------------------
# Kernels
# ----------------------------------------------------------------------------
def _embed_kernel(ids_ref, pe_ref, emb_hbm, o_ref, gbuf, sem, *, scale, S, TM):
    """Row-block embedding gather, * sqrt(ninp), + positional encoding.

    ids_ref : (N,) int32 in SMEM (scalar prefetch), rows batch-major (b*S + s)
    pe_ref  : (S, Ep) f32 in VMEM, resident across the grid
    emb_hbm : (vocab, Ep) f32 left in HBM (memory_space=pl.ANY)
    o_ref   : (TM, Ep) f32 output block
    gbuf    : (TM, Ep) f32 VMEM gather scratch
    """
    base = pl.program_id(0) * TM
    # Issue all row DMAs for this block, then drain them (the copies overlap
    # each other; descriptors in the wait loop match the issued ones exactly).
    # TODO(synk): for large vocab / large blocks, double-buffer half-block
    # gathers against the scale+PE compute and keep the table in bf16.
    for i in range(TM):
        pltpu.make_async_copy(emb_hbm.at[pl.ds(ids_ref[base + i], 1)],
                              gbuf.at[pl.ds(i, 1)], sem.at[0]).start()
    for i in range(TM):
        pltpu.make_async_copy(emb_hbm.at[pl.ds(ids_ref[base + i], 1)],
                              gbuf.at[pl.ds(i, 1)], sem.at[0]).wait()

    Ep = o_ref.shape[-1]
    x = gbuf[...] * scale                                 # (TM, Ep), * sqrt(ninp)
    x = x.reshape(TM // S, S, Ep) + pe_ref[...][None]     # + PE, broadcast over batch
    o_ref[...] = x.reshape(TM, Ep)                        # lane-dense store
    # pos_encoder dropout = identity (eval)


def _encoder_stack_kernel(x_ref,
                          ln1w_ref, ln1b_ref, wqkv_ref, bqkv_ref, wo_ref, bo_ref,
                          ln2w_ref, ln2b_ref, w1_ref, b1_ref, w2_ref, b2_ref,
                          o_ref, *, S, H, E_real):
    """One (row_block, layer) grid step of the fused encoder stack.

    The output block (index constant in the layer axis) is the resident
    residual stream: initialized from x_ref at layer 0, updated in place for
    every layer, written back to HBM only when the row block changes.

    Attention over a row block containing several batch elements is computed
    as one block-diagonal-masked attention (rows only attend within their own
    batch element), which keeps the MXU batched over heads with >=128 rows.
    """
    f32, bf16 = jnp.float32, jnp.bfloat16
    TM, Ep = o_ref.shape
    hdp = Ep // H                          # padded head dim
    att_scale = 1.0 / math.sqrt(E_real // H)   # PyTorch scales by 1/sqrt(real head_dim)
    inv_e = 1.0 / E_real
    eps = 1e-5
    l = pl.program_id(1)

    @pl.when(l == 0)
    def _():                               # load the embedding output once per row block
        o_ref[...] = x_ref[...]

    # lanes >= E_real are zero padding; keep them exactly zero through layernorm
    lane_mask = (jax.lax.broadcasted_iota(jnp.int32, (1, Ep), 1) < E_real).astype(f32)

    def layernorm(v, w, b):
        mu = jnp.sum(v, axis=-1, keepdims=True) * inv_e           # pads are 0
        d = (v - mu) * lane_mask
        var = jnp.sum(d * d, axis=-1, keepdims=True) * inv_e
        return d * jax.lax.rsqrt(var + eps) * w + b               # pads stay 0 (w,b pads = 0)

    def matmul(a, w, bias):
        return jnp.dot(a.astype(bf16), w, preferred_element_type=f32) + bias

    x = o_ref[...]                                                # (TM, Ep) f32 residual stream

    # ---------------- self-attention block (pre-norm, src_mask=None) ----------------
    src2 = layernorm(x, ln1w_ref[...], ln1b_ref[...])
    qkv = matmul(src2, wqkv_ref[...], bqkv_ref[...])              # (TM, 3Ep), fused q/k/v

    # Single transpose for the head split (sublane-dim slices at Ep boundaries).
    qkv_t = qkv.astype(bf16).T                                    # (3Ep, TM)
    qh = qkv_t[:Ep, :].reshape(H, hdp, TM)                        # (H, hdp, TM)
    kh = qkv_t[Ep:2 * Ep, :].reshape(H, hdp, TM)
    vh = qkv_t[2 * Ep:, :].reshape(H, hdp, TM)

    scores = jax.lax.dot_general(                                 # (H, TM, TM) f32
        qh, kh, (((1,), (1,)), ((0,), (0,))),
        preferred_element_type=f32) * att_scale

    # block-diagonal mask: row i attends row j iff same batch element (i//S == j//S)
    bi = jax.lax.broadcasted_iota(jnp.int32, (TM, TM), 0) // S
    bj = jax.lax.broadcasted_iota(jnp.int32, (TM, TM), 1) // S
    scores = scores + jnp.where(bi == bj, 0.0, -1e30)[None]
    # TODO(synk): for long sequences, switch to an online-softmax (flash) loop
    # over K/V tiles instead of materializing (H, TM, TM) scores.

    scores = scores - jnp.max(scores, axis=-1, keepdims=True)
    prob = jnp.exp(scores)
    prob = prob * pl.reciprocal(jnp.sum(prob, axis=-1, keepdims=True), approx=True)

    ctx_t = jax.lax.dot_general(                                  # (H, hdp, TM) f32
        vh, prob.astype(bf16), (((2,), (2,)), ((0,), (0,))),
        preferred_element_type=f32)
    ctx = ctx_t.reshape(Ep, TM).T                                 # (TM, Ep), per-head layout

    x = x + matmul(ctx, wo_ref[...], bo_ref[...])                 # dropout1 = identity (eval)

    # ---------------- feed-forward block (pre-norm) ----------------
    src2 = layernorm(x, ln2w_ref[...], ln2b_ref[...])
    hid = jnp.maximum(matmul(src2, w1_ref[...], b1_ref[...]), 0.0)  # ReLU; inner dropout = id
    x = x + matmul(hid, w2_ref[...], b2_ref[...])                   # dropout2 = identity (eval)

    o_ref[...] = x                        # stays resident in VMEM until row block changes


def _decoder_kernel(x_ref, w_ref, b_ref, o_ref):
    """One (rows, vocab) output tile of the final Linear(E -> ntoken)."""
    o_ref[...] = jnp.dot(x_ref[...].astype(jnp.bfloat16), w_ref[...],
                         preferred_element_type=jnp.float32) + b_ref[...]


# ----------------------------------------------------------------------------
# Parameters (raw = PyTorch-layout; prepared = padded/transposed/bf16, built once)
# ----------------------------------------------------------------------------
def init_params(key, ntoken, ninp, nhead, nhid, nlayers):
    E = ninp
    keys = jax.random.split(key, 2 + nlayers)
    params = {
        'emb': jax.random.uniform(keys[0], (ntoken, E), jnp.float32, -0.1, 0.1),
        'dec_w': jax.random.uniform(keys[1], (ntoken, E), jnp.float32, -0.1, 0.1),
        'dec_b': jnp.zeros((ntoken,), jnp.float32),
        'layers': [],
    }
    for l in range(nlayers):
        lk = jax.random.split(keys[2 + l], 4)
        params['layers'].append(dict(
            ln1_w=jnp.ones((E,), jnp.float32), ln1_b=jnp.zeros((E,), jnp.float32),
            in_proj_w=jax.random.normal(lk[0], (3 * E, E), jnp.float32) / math.sqrt(E),
            in_proj_b=jnp.zeros((3 * E,), jnp.float32),
            out_w=jax.random.normal(lk[1], (E, E), jnp.float32) / math.sqrt(E),
            out_b=jnp.zeros((E,), jnp.float32),
            ln2_w=jnp.ones((E,), jnp.float32), ln2_b=jnp.zeros((E,), jnp.float32),
            w1=jax.random.normal(lk[2], (nhid, E), jnp.float32) / math.sqrt(E),
            b1=jnp.zeros((nhid,), jnp.float32),
            w2=jax.random.normal(lk[3], (E, nhid), jnp.float32) / math.sqrt(nhid),
            b2=jnp.zeros((E,), jnp.float32),
        ))
    return params


def prepare_params(params, nhead):
    """One-time layout prep (hoisted out of forward): pad feature dims to the
    128-lane tile, transpose nn.Linear weights to (in, out), fuse q/k/v into a
    single per-head-padded (Ep, 3Ep) weight, stack layer weights on a leading
    nlayers dim (for the fused-layer grid), cast matmul weights to bf16."""
    ntoken, E = params['emb'].shape
    nhid = params['layers'][0]['b1'].shape[0]
    L = len(params['layers'])
    H = nhead
    hd = E // H
    Ep = _round_up(E, 128)
    NHp = _round_up(nhid, 128)
    Vp = _round_up(ntoken, 128)
    assert Ep % H == 0, "padded model dim must stay divisible by nhead"
    hdp = Ep // H
    f32, bf16 = jnp.float32, jnp.bfloat16

    def pad_to(a, shape):
        return jnp.pad(a, [(0, t - s) for s, t in zip(a.shape, shape)])

    def row_vec(v, n):                       # (x,) -> (1, n) f32, zero-padded at the end
        return pad_to(v, (n,)).reshape(1, n).astype(f32)

    def head_vec(v):                         # (E,) -> (1, Ep), per-head padded
        return pad_to(v.reshape(H, hd), (H, hdp)).reshape(1, Ep).astype(f32)

    def qkv_weight(w):                       # PyTorch (out=E, in=E) -> (Ep, Ep) bf16
        w_t = w.T                                                        # (in, out)
        w_t = pad_to(w_t.reshape(E, H, hd), (E, H, hdp)).reshape(E, Ep)  # per-head pad out dim
        return pad_to(w_t, (Ep, Ep)).astype(bf16)                        # end-pad in dim

    def out_weight(w):                       # PyTorch (out=E, in=ctx E) -> (Ep, Ep) bf16
        w_t = w.T                                                        # (ctx_in, out)
        w_t = pad_to(w_t.reshape(H, hd, E), (H, hdp, E)).reshape(Ep, E)  # per-head pad in dim
        return pad_to(w_t, (Ep, Ep)).astype(bf16)                        # end-pad out dim

    keys = ('ln1_w', 'ln1_b', 'wqkv', 'bqkv', 'wo', 'bo',
            'ln2_w', 'ln2_b', 'w1', 'b1', 'w2', 'b2')
    per_layer = {k: [] for k in keys}
    for lyr in params['layers']:
        wq, wk, wv = (lyr['in_proj_w'][i * E:(i + 1) * E] for i in range(3))
        bq, bk, bv = (lyr['in_proj_b'][i * E:(i + 1) * E] for i in range(3))
        per_layer['ln1_w'].append(row_vec(lyr['ln1_w'], Ep))
        per_layer['ln1_b'].append(row_vec(lyr['ln1_b'], Ep))
        per_layer['wqkv'].append(jnp.concatenate(
            [qkv_weight(wq), qkv_weight(wk), qkv_weight(wv)], axis=1))   # (Ep, 3Ep)
        per_layer['bqkv'].append(jnp.concatenate(
            [head_vec(bq), head_vec(bk), head_vec(bv)], axis=1))         # (1, 3Ep)
        per_layer['wo'].append(out_weight(lyr['out_w']))
        per_layer['bo'].append(row_vec(lyr['out_b'], Ep))
        per_layer['ln2_w'].append(row_vec(lyr['ln2_w'], Ep))
        per_layer['ln2_b'].append(row_vec(lyr['ln2_b'], Ep))
        per_layer['w1'].append(pad_to(lyr['w1'].T, (Ep, NHp)).astype(bf16))
        per_layer['b1'].append(row_vec(lyr['b1'], NHp))
        per_layer['w2'].append(pad_to(lyr['w2'].T, (NHp, Ep)).astype(bf16))
        per_layer['b2'].append(row_vec(lyr['b2'], Ep))

    enc = {k: jnp.stack(v, axis=0) for k, v in per_layer.items()}   # leading dim = nlayers

    return {
        'meta': dict(E=E, Ep=Ep, H=H, NHp=NHp, ntoken=ntoken, Vp=Vp, L=L),
        'emb': pad_to(params['emb'], (ntoken, Ep)).astype(f32),     # (vocab, Ep) row-gather table
        'dec_w': pad_to(params['dec_w'].T, (Ep, Vp)).astype(bf16),
        'dec_b': row_vec(params['dec_b'], Vp),
        'enc': enc,
    }


# ----------------------------------------------------------------------------
# pallas_call wrappers
# ----------------------------------------------------------------------------
def _pick_batch_block(B, S, target_rows=256):
    """Largest divisor of B whose row block B_blk*S stays <= target_rows
    (>=256 rows fills the v6e/v7x MXU; 128 suffices on v5e)."""
    best = 1
    for d in range(1, B + 1):
        if B % d == 0 and d * S <= max(target_rows, S):
            best = d
    return best


def _embed(ids, pe, emb_table, *, N, S, TM, Ep, scale, vmem_limit):
    return pl.pallas_call(
        functools.partial(_embed_kernel, scale=scale, S=S, TM=TM),
        grid_spec=pltpu.PrefetchScalarGridSpec(
            num_scalar_prefetch=1,                                   # ids -> SMEM
            grid=(N // TM,),
            in_specs=[pl.BlockSpec((S, Ep), lambda r, ids: (0, 0)),  # PE, resident
                      pl.BlockSpec(memory_space=pl.ANY)],            # emb table stays in HBM
            out_specs=pl.BlockSpec((TM, Ep), lambda r, ids: (r, 0)),
            scratch_shapes=[pltpu.VMEM((TM, Ep), jnp.float32),
                            pltpu.SemaphoreType.DMA((1,))]),
        out_shape=jax.ShapeDtypeStruct((N, Ep), jnp.float32),
        compiler_params=pltpu.CompilerParams(
            dimension_semantics=("arbitrary",),
            vmem_limit_bytes=vmem_limit),
    )(ids, pe, emb_table)


def _encoder_stack(x, enc, *, S, TM, H, E, Ep, NHp, L, vmem_limit):
    N = x.shape[0]
    nblocks = N // TM

    def wspec(d0, d1):                       # per-layer weight slab (leading dim squeezed)
        return pl.BlockSpec((None, d0, d1), lambda r, l: (l, 0, 0))

    return pl.pallas_call(
        functools.partial(_encoder_stack_kernel, S=S, H=H, E_real=E),
        grid=(nblocks, L),                                      # row blocks outer, layers inner
        out_shape=jax.ShapeDtypeStruct((N, Ep), jnp.float32),
        in_specs=[pl.BlockSpec((TM, Ep), lambda r, l: (r, 0)),  # embeddings, fetched once per r
                  wspec(1, Ep), wspec(1, Ep),                   # ln1 w, b
                  wspec(Ep, 3 * Ep), wspec(1, 3 * Ep),          # fused wqkv, bqkv
                  wspec(Ep, Ep), wspec(1, Ep),                  # wo, bo
                  wspec(1, Ep), wspec(1, Ep),                   # ln2 w, b
                  wspec(Ep, NHp), wspec(1, NHp),                # w1, b1
                  wspec(NHp, Ep), wspec(1, Ep)],                # w2, b2
        # constant in l -> activations stay resident in VMEM across all layers
        out_specs=pl.BlockSpec((TM, Ep), lambda r, l: (r, 0)),
        compiler_params=pltpu.CompilerParams(
            # row-block axis "parallel" (both TCs on v7x when nblocks is even),
            # layer axis "arbitrary" (output block revisited across layers).
            dimension_semantics=("parallel", "arbitrary"),
            vmem_limit_bytes=vmem_limit),
    )(x, enc['ln1_w'], enc['ln1_b'], enc['wqkv'], enc['bqkv'], enc['wo'], enc['bo'],
      enc['ln2_w'], enc['ln2_b'], enc['w1'], enc['b1'], enc['w2'], enc['b2'])


def _decoder(x, w, b, *, N, Ep, Vp, vmem_limit):
    # TODO(synk): for large E also tile the contraction dim with a pl.when accumulator.
    tm = next((t for t in (256, 128, 64, 32, 16, 8) if N % t == 0), N)
    tn = next((t for t in (512, 256, 128) if Vp % t == 0), Vp)
    return pl.pallas_call(
        _decoder_kernel,
        # vocab axis outer, row axis inner: every decoder-weight tile (the
        # dominant HBM operand for realistic vocabs) streams from HBM once.
        grid=(Vp // tn, N // tm),
        out_shape=jax.ShapeDtypeStruct((N, Vp), jnp.float32),
        in_specs=[pl.BlockSpec((tm, Ep), lambda j, i: (i, 0)),
                  pl.BlockSpec((Ep, tn), lambda j, i: (j, 0)),
                  pl.BlockSpec((1, tn), lambda j, i: (0, j))],
        out_specs=pl.BlockSpec((tm, tn), lambda j, i: (i, j)),
        compiler_params=pltpu.CompilerParams(
            dimension_semantics=("parallel", "parallel"),
            vmem_limit_bytes=vmem_limit),
    )(x, w, b)


def transformer_forward(p, src):
    """TransformerModel.forward (eval mode, freqs=None) on prepared params.
    src: (S, B) int32 token ids.  Returns (S, B, ntoken) f32 logits."""
    m = p['meta']
    E, Ep, H, NHp, ntoken, Vp, L = (m['E'], m['Ep'], m['H'], m['NHp'],
                                    m['ntoken'], m['Vp'], m['L'])
    S, B = src.shape
    N = B * S
    assert S % 8 == 0, "row blocks need S to be a multiple of 8"
    vmem_limit = _vmem_limit_bytes()

    B_blk = _pick_batch_block(B, S)          # rows per grid step = B_blk * S
    TM = B_blk * S

    # token ids in batch-major row order: row b*S + s  <->  PyTorch (s, b)
    ids = src.T.reshape(N).astype(jnp.int32)

    # sinusoidal positional encoding (first S rows), zero-padded to Ep lanes
    pos = jnp.arange(S, dtype=jnp.float32)[:, None]
    div = jnp.exp(jnp.arange(0, E, 2, dtype=jnp.float32) * (-math.log(10000.0) / E))
    pe = jnp.zeros((S, E), jnp.float32)
    pe = pe.at[:, 0::2].set(jnp.sin(pos * div))
    pe = pe.at[:, 1::2].set(jnp.cos(pos * div)[:, :E // 2])
    pe = jnp.pad(pe, ((0, 0), (0, Ep - E)))

    # --- embedding gather * sqrt(ninp) + positional encoding -------------------
    x = _embed(ids, pe, p['emb'], N=N, S=S, TM=TM, Ep=Ep,
               scale=float(math.sqrt(E)), vmem_limit=vmem_limit)

    # --- fused encoder stack (all layers in one pallas_call) -------------------
    x = _encoder_stack(x, p['enc'], S=S, TM=TM, H=H, E=E, Ep=Ep, NHp=NHp, L=L,
                       vmem_limit=vmem_limit)

    # --- decoder Linear(E -> ntoken) --------------------------------------------
    logits = _decoder(x, p['dec_w'], p['dec_b'], N=N, Ep=Ep, Vp=Vp,
                      vmem_limit=vmem_limit)

    # back to PyTorch (S, B, ntoken), dropping vocab padding
    return logits.reshape(B, S, Vp).transpose(1, 0, 2)[:, :, :ntoken]


# ----------------------------------------------------------------------------
# Pure-JAX f32 reference (mirrors the PyTorch module, eval mode)
# ----------------------------------------------------------------------------
def _layernorm_ref(v, w, b):
    mu = jnp.mean(v, axis=-1, keepdims=True)
    var = jnp.mean((v - mu) ** 2, axis=-1, keepdims=True)
    return (v - mu) / jnp.sqrt(var + 1e-5) * w + b


def reference_forward(raw, src, nhead):
    ntoken, E = raw['emb'].shape
    S, B = src.shape
    H, hd = nhead, E // nhead
    x = raw['emb'][src] * math.sqrt(E)                       # (S, B, E)
    pos = jnp.arange(S, dtype=jnp.float32)[:, None]
    div = jnp.exp(jnp.arange(0, E, 2, dtype=jnp.float32) * (-math.log(10000.0) / E))
    pe = jnp.zeros((S, E), jnp.float32)
    pe = pe.at[:, 0::2].set(jnp.sin(pos * div))
    pe = pe.at[:, 1::2].set(jnp.cos(pos * div)[:, :E // 2])
    x = x + pe[:, None, :]
    for lyr in raw['layers']:
        s2 = _layernorm_ref(x, lyr['ln1_w'], lyr['ln1_b'])
        q = s2 @ lyr['in_proj_w'][:E].T + lyr['in_proj_b'][:E]
        k = s2 @ lyr['in_proj_w'][E:2 * E].T + lyr['in_proj_b'][E:2 * E]
        v = s2 @ lyr['in_proj_w'][2 * E:].T + lyr['in_proj_b'][2 * E:]
        split = lambda t: t.reshape(S, B, H, hd).transpose(1, 2, 0, 3)   # (B,H,S,hd)
        qh, kh, vh = split(q), split(k), split(v)
        prob = jax.nn.softmax(jnp.einsum('bhqd,bhkd->bhqk', qh, kh) / math.sqrt(hd), axis=-1)
        ctx = jnp.einsum('bhqk,bhkd->bhqd', prob, vh).transpose(2, 0, 1, 3).reshape(S, B, E)
        x = x + ctx @ lyr['out_w'].T + lyr['out_b']
        s2 = _layernorm_ref(x, lyr['ln2_w'], lyr['ln2_b'])
        x = x + jnp.maximum(s2 @ lyr['w1'].T + lyr['b1'], 0.0) @ lyr['w2'].T + lyr['b2']
    return x @ raw['dec_w'].T + raw['dec_b']                 # (S, B, ntoken)


# ----------------------------------------------------------------------------
if __name__ == "__main__":
    ntoken, ninp, nhead, nhid, nlayers = 50, 32, 4, 64, 2
    S, B = 8, 2

    key = jax.random.PRNGKey(0)
    pkey, dkey = jax.random.split(key)
    raw = init_params(pkey, ntoken, ninp, nhead, nhid, nlayers)
    params = prepare_params(raw, nhead)          # one-time layout prep
    src = jax.random.randint(dkey, (S, B), 0, ntoken, dtype=jnp.int32)

    out = transformer_forward(params, src)
    out = jax.block_until_ready(out)
    assert out.shape == (S, B, ntoken) and out.dtype == jnp.float32

    # loose sanity check vs the pure-JAX reference (kernel uses bf16 MXU inputs)
    ref = reference_forward(raw, src, nhead)
    err = float(jnp.max(jnp.abs(out - ref)))
    assert err < 0.25, f"kernel/reference mismatch: max abs err {err}"

    print("KERNEL_OK")
</pallas_src>

<mosaic_0001>
module attributes {stable_mosaic.version = 11 : i64} {
  func.func @_embed_kernel(%arg0: i32, %arg1: memref<16xi32, #tpu.memory_space<smem>>, %arg2: memref<8x128xf32, #tpu.memory_space<vmem>>, %arg3: memref<50x128xf32, #tpu.memory_space<any>>, %arg4: memref<16x128xf32, #tpu.memory_space<vmem>>, %arg5: memref<16x128xf32, #tpu.memory_space<vmem>>, %arg6: memref<1x!tpu.dma_semaphore, #tpu.memory_space<semaphore_mem>>) attributes {dimension_semantics = [#tpu.dimension_semantics<arbitrary>], iteration_bounds = array<i64: 1>, scalar_prefetch = 1 : i64, scratch_operands = 2 : i64, tpu.core_type = #tpu.core_type<tc>, window_params = [{pipeline_mode = #tpu.pipeline_mode<synchronous>, transform_indices = @transform_0, window_bounds = array<i64: 8, 128>}, {}, {transform_indices = @transform_2, window_bounds = array<i64: 16, 128>}]} {
    %c16_i32 = arith.constant 16 : i32
    %0 = arith.muli %arg0, %c16_i32 : i32
    %c0_i32 = arith.constant 0 : i32
    %1 = arith.addi %0, %c0_i32 : i32
    %2 = arith.index_cast %1 : i32 to index
    %3 = memref.load %arg1[%2] : memref<16xi32, #tpu.memory_space<smem>>
    %c0_i32_0 = arith.constant 0 : i32
    %c0_i32_1 = arith.constant 0 : i32
    %4 = tpu.memref_slice %arg3[%3, %c0_i32_1] : memref<50x128xf32, #tpu.memory_space<any>> -> memref<1x128xf32, #tpu.memory_space<any>>
    %c0_i32_2 = arith.constant 0 : i32
    %c0_i32_3 = arith.constant 0 : i32
    %5 = tpu.memref_slice %arg5[%c0_i32_2, %c0_i32_3] : memref<16x128xf32, #tpu.memory_space<vmem>> -> memref<1x128xf32, #tpu.memory_space<vmem>>
    %6 = tpu.memref_slice %arg6[%c0_i32_0] : memref<1x!tpu.dma_semaphore, #tpu.memory_space<semaphore_mem>> -> memref<1x!tpu.dma_semaphore, #tpu.memory_space<semaphore_mem>>
    %7 = tpu.memref_squeeze %6 : memref<1x!tpu.dma_semaphore, #tpu.memory_space<semaphore_mem>> -> memref<!tpu.dma_semaphore, #tpu.memory_space<semaphore_mem>>
    tpu.enqueue_dma source(%4 : memref<1x128xf32, #tpu.memory_space<any>>) target(%5 : memref<1x128xf32, #tpu.memory_space<vmem>>) target_semaphore(%7 : memref<!tpu.dma_semaphore, #tpu.memory_space<semaphore_mem>>)
    %c1_i32 = arith.constant 1 : i32
    %8 = arith.addi %0, %c1_i32 : i32
    %9 = arith.index_cast %8 : i32 to index
    %10 = memref.load %arg1[%9] : memref<16xi32, #tpu.memory_space<smem>>
    %c0_i32_4 = arith.constant 0 : i32
    %c0_i32_5 = arith.constant 0 : i32
    %11 = tpu.memref_slice %arg3[%10, %c0_i32_5] : memref<50x128xf32, #tpu.memory_space<any>> -> memref<1x128xf32, #tpu.memory_space<any>>
    %c1_i32_6 = arith.constant 1 : i32
    %c0_i32_7 = arith.constant 0 : i32
    %12 = tpu.memref_slice %arg5[%c1_i32_6, %c0_i32_7] : memref<16x128xf32, #tpu.memory_space<vmem>> -> memref<1x128xf32, #tpu.memory_space<vmem>>
    %13 = tpu.memref_slice %arg6[%c0_i32_4] : memref<1x!tpu.dma_semaphore, #tpu.memory_space<semaphore_mem>> -> memref<1x!tpu.dma_semaphore, #tpu.memory_space<semaphore_mem>>
    %14 = tpu.memref_squeeze %13 : memref<1x!tpu.dma_semaphore, #tpu.memory_space<semaphore_mem>> -> memref<!tpu.dma_semaphore, #tpu.memory_space<semaphore_mem>>
    tpu.enqueue_dma source(%11 : memref<1x128xf32, #tpu.memory_space<any>>) target(%12 : memref<1x128xf32, #tpu.memory_space<vmem>>) target_semaphore(%14 : memref<!tpu.dma_semaphore, #tpu.memory_space<semaphore_mem>>)
    %c2_i32 = arith.constant 2 : i32
    %15 = arith.addi %0, %c2_i32 : i32
    %16 = arith.index_cast %15 : i32 to index
    %17 = memref.load %arg1[%16] : memref<16xi32, #tpu.memory_space<smem>>
    %c0_i32_8 = arith.constant 0 : i32
    %c0_i32_9 = arith.constant 0 : i32
    %18 = tpu.memref_slice %arg3[%17, %c0_i32_9] : memref<50x128xf32, #tpu.memory_space<any>> -> memref<1x128xf32, #tpu.memory_space<any>>
    %c2_i32_10 = arith.constant 2 : i32
    %c0_i32_11 = arith.constant 0 : i32
    %19 = tpu.memref_slice %arg5[%c2_i32_10, %c0_i32_11] : memref<16x128xf32, #tpu.memory_space<vmem>> -> memref<1x128xf32, #tpu.memory_space<vmem>>
    %20 = tpu.memref_slice %arg6[%c0_i32_8] : memref<1x!tpu.dma_semaphore, #tpu.memory_space<semaphore_mem>> -> memref<1x!tpu.dma_semaphore, #tpu.memory_space<semaphore_mem>>
    %21 = tpu.memref_squeeze %20 : memref<1x!tpu.dma_semaphore, #tpu.memory_space<semaphore_mem>> -> memref<!tpu.dma_semaphore, #tpu.memory_space<semaphore_mem>>
    tpu.enqueue_dma source(%18 : memref<1x128xf32, #tpu.memory_space<any>>) target(%19 : memref<1x128xf32, #tpu.memory_space<vmem>>) target_semaphore(%21 : memref<!tpu.dma_semaphore, #tpu.memory_space<semaphore_mem>>)
    %c3_i32 = arith.constant 3 : i32
    %22 = arith.addi %0, %c3_i32 : i32
    %23 = arith.index_cast %22 : i32 to index
    %24 = memref.load %arg1[%23] : memref<16xi32, #tpu.memory_space<smem>>
    %c0_i32_12 = arith.constant 0 : i32
    %c0_i32_13 = arith.constant 0 : i32
    %25 = tpu.memref_slice %arg3[%24, %c0_i32_13] : memref<50x128xf32, #tpu.memory_space<any>> -> memref<1x128xf32, #tpu.memory_space<any>>
    %c3_i32_14 = arith.constant 3 : i32
    %c0_i32_15 = arith.constant 0 : i32
    %26 = tpu.memref_slice %arg5[%c3_i32_14, %c0_i32_15] : memref<16x128xf32, #tpu.memory_space<vmem>> -> memref<1x128xf32, #tpu.memory_space<vmem>>
    %27 = tpu.memref_slice %arg6[%c0_i32_12] : memref<1x!tpu.dma_semaphore, #tpu.memory_space<semaphore_mem>> -> memref<1x!tpu.dma_semaphore, #tpu.memory_space<semaphore_mem>>
    %28 = tpu.memref_squeeze %27 : memref<1x!tpu.dma_semaphore, #tpu.memory_space<semaphore_mem>> -> memref<!tpu.dma_semaphore, #tpu.memory_space<semaphore_mem>>
    tpu.enqueue_dma source(%25 : memref<1x128xf32, #tpu.memory_space<any>>) target(%26 : memref<1x128xf32, #tpu.memory_space<vmem>>) target_semaphore(%28 : memref<!tpu.dma_semaphore, #tpu.memory_space<semaphore_mem>>)
    %c4_i32 = arith.constant 4 : i32
    %29 = arith.addi %0, %c4_i32 : i32
    %30 = arith.index_cast %29 : i32 to index
    %31 = memref.load %arg1[%30] : memref<16xi32, #tpu.memory_space<smem>>
    %c0_i32_16 = arith.constant 0 : i32
    %c0_i32_17 = arith.constant 0 : i32
    %32 = tpu.memref_slice %arg3[%31, %c0_i32_17] : memref<50x128xf32, #tpu.memory_space<any>> -> memref<1x128xf32, #tpu.memory_space<any>>
    %c4_i32_18 = arith.constant 4 : i32
    %c0_i32_19 = arith.constant 0 : i32
    %33 = tpu.memref_slice %arg5[%c4_i32_18, %c0_i32_19] : memref<16x128xf32, #tpu.memory_space<vmem>> -> memref<1x128xf32, #tpu.memory_space<vmem>>
    %34 = tpu.memref_slice %arg6[%c0_i32_16] : memref<1x!tpu.dma_semaphore, #tpu.memory_space<semaphore_mem>> -> memref<1x!tpu.dma_semaphore, #tpu.memory_space<semaphore_mem>>
    %35 = tpu.memref_squeeze %34 : memref<1x!tpu.dma_semaphore, #tpu.memory_space<semaphore_mem>> -> memref<!tpu.dma_semaphore, #tpu.memory_space<semaphore_mem>>
    tpu.enqueue_dma source(%32 : memref<1x128xf32, #tpu.memory_space<any>>) target(%33 : memref<1x128xf32, #tpu.memory_space<vmem>>) target_semaphore(%35 : memref<!tpu.dma_semaphore, #tpu.memory_space<semaphore_mem>>)
    %c5_i32 = arith.constant 5 : i32
    %36 = arith.addi %0, %c5_i32 : i32
    %37 = arith.index_cast %36 : i32 to index
    %38 = memref.load %arg1[%37] : memref<16xi32, #tpu.memory_space<smem>>
    %c0_i32_20 = arith.constant 0 : i32
    %c0_i32_21 = arith.constant 0 : i32
    %39 = tpu.memref_slice %arg3[%38, %c0_i32_21] : memref<50x128xf32, #tpu.memory_space<any>> -> memref<1x128xf32, #tpu.memory_space<any>>
    %c5_i32_22 = arith.constant 5 : i32
    %c0_i32_23 = arith.constant 0 : i32
    %40 = tpu.memref_slice %arg5[%c5_i32_22, %c0_i32_23] : memref<16x128xf32, #tpu.memory_space<vmem>> -> memref<1x128xf32, #tpu.memory_space<vmem>>
    %41 = tpu.memref_slice %arg6[%c0_i32_20] : memref<1x!tpu.dma_semaphore, #tpu.memory_space<semaphore_mem>> -> memref<1x!tpu.dma_semaphore, #tpu.memory_space<semaphore_mem>>
    %42 = tpu.memref_squeeze %41 : memref<1x!tpu.dma_semaphore, #tpu.memory_space<semaphore_mem>> -> memref<!tpu.dma_semaphore, #tpu.memory_space<semaphore_mem>>
    tpu.enqueue_dma source(%39 : memref<1x128xf32, #tpu.memory_space<any>>) target(%40 : memref<1x128xf32, #tpu.memory_space<vmem>>) target_semaphore(%42 : memref<!tpu.dma_semaphore, #tpu.memory_space<semaphore_mem>>)
    %c6_i32 = arith.constant 6 : i32
    %43 = arith.addi %0, %c6_i32 : i32
    %44 = arith.index_cast %43 : i32 to index
    %45 = memref.load %arg1[%44] : memref<16xi32, #tpu.memory_space<smem>>
    %c0_i32_24 = arith.constant 0 : i32
    %c0_i32_25 = arith.constant 0 : i32
    %46 = tpu.memref_slice %arg3[%45, %c0_i32_25] : memref<50x128xf32, #tpu.memory_space<any>> -> memref<1x128xf32, #tpu.memory_space<any>>
    %c6_i32_26 = arith.constant 6 : i32
    %c0_i32_27 = arith.constant 0 : i32
    %47 = tpu.memref_slice %arg5[%c6_i32_26, %c0_i32_27] : memref<16x128xf32, #tpu.memory_space<vmem>> -> memref<1x128xf32, #tpu.memory_space<vmem>>
    %48 = tpu.memref_slice %arg6[%c0_i32_24] : memref<1x!tpu.dma_semaphore, #tpu.memory_space<semaphore_mem>> -> memref<1x!tpu.dma_semaphore, #tpu.memory_space<semaphore_mem>>
    %49 = tpu.memref_squeeze %48 : memref<1x!tpu.dma_semaphore, #tpu.memory_space<semaphore_mem>> -> memref<!tpu.dma_semaphore, #tpu.memory_space<semaphore_mem>>
    tpu.enqueue_dma source(%46 : memref<1x128xf32, #tpu.memory_space<any>>) target(%47 : memref<1x128xf32, #tpu.memory_space<vmem>>) target_semaphore(%49 : memref<!tpu.dma_semaphore, #tpu.memory_space<semaphore_mem>>)
    %c7_i32 = arith.constant 7 : i32
    %50 = arith.addi %0, %c7_i32 : i32
    %51 = arith.index_cast %50 : i32 to index
    %52 = memref.load %arg1[%51] : memref<16xi32, #tpu.memory_space<smem>>
    %c0_i32_28 = arith.constant 0 : i32
    %c0_i32_29 = arith.constant 0 : i32
    %53 = tpu.memref_slice %arg3[%52, %c0_i32_29] : memref<50x128xf32, #tpu.memory_space<any>> -> memref<1x128xf32, #tpu.memory_space<any>>
    %c7_i32_30 = arith.constant 7 : i32
    %c0_i32_31 = arith.constant 0 : i32
    %54 = tpu.memref_slice %arg5[%c7_i32_30, %c0_i32_31] : memref<16x128xf32, #tpu.memory_space<vmem>> -> memref<1x128xf32, #tpu.memory_space<vmem>>
    %55 = tpu.memref_slice %arg6[%c0_i32_28] : memref<1x!tpu.dma_semaphore, #tpu.memory_space<semaphore_mem>> -> memref<1x!tpu.dma_semaphore, #tpu.memory_space<semaphore_mem>>
    %56 = tpu.memref_squeeze %55 : memref<1x!tpu.dma_semaphore, #tpu.memory_space<semaphore_mem>> -> memref<!tpu.dma_semaphore, #tpu.memory_space<semaphore_mem>>
    tpu.enqueue_dma source(%53 : memref<1x128xf32, #tpu.memory_space<any>>) target(%54 : memref<1x128xf32, #tpu.memory_space<vmem>>) target_semaphore(%56 : memref<!tpu.dma_semaphore, #tpu.memory_space<semaphore_mem>>)
    %c8_i32 = arith.constant 8 : i32
    %57 = arith.addi %0, %c8_i32 : i32
    %58 = arith.index_cast %57 : i32 to index
    %59 = memref.load %arg1[%58] : memref<16xi32, #tpu.memory_space<smem>>
    %c0_i32_32 = arith.constant 0 : i32
    %c0_i32_33 = arith.constant 0 : i32
    %60 = tpu.memref_slice %arg3[%59, %c0_i32_33] : memref<50x128xf32, #tpu.memory_space<any>> -> memref<1x128xf32, #tpu.memory_space<any>>
    %c8_i32_34 = arith.constant 8 : i32
    %c0_i32_35 = arith.constant 0 : i32
    %61 = tpu.memref_slice %arg5[%c8_i32_34, %c0_i32_35] : memref<16x128xf32, #tpu.memory_space<vmem>> -> memref<1x128xf32, #tpu.memory_space<vmem>>
    %62 = tpu.memref_slice %arg6[%c0_i32_32] : memref<1x!tpu.dma_semaphore, #tpu.memory_space<semaphore_mem>> -> memref<1x!tpu.dma_semaphore, #tpu.memory_space<semaphore_mem>>
    %63 = tpu.memref_squeeze %62 : memref<1x!tpu.dma_semaphore, #tpu.memory_space<semaphore_mem>> -> memref<!tpu.dma_semaphore, #tpu.memory_space<semaphore_mem>>
    tpu.enqueue_dma source(%60 : memref<1x128xf32, #tpu.memory_space<any>>) target(%61 : memref<1x128xf32, #tpu.memory_space<vmem>>) target_semaphore(%63 : memref<!tpu.dma_semaphore, #tpu.memory_space<semaphore_mem>>)
    %c9_i32 = arith.constant 9 : i32
    %64 = arith.addi %0, %c9_i32 : i32
    %65 = arith.index_cast %64 : i32 to index
    %66 = memref.load %arg1[%65] : memref<16xi32, #tpu.memory_space<smem>>
    %c0_i32_36 = arith.constant 0 : i32
    %c0_i32_37 = arith.constant 0 : i32
    %67 = tpu.memref_slice %arg3[%66, %c0_i32_37] : memref<50x128xf32, #tpu.memory_space<any>> -> memref<1x128xf32, #tpu.memory_space<any>>
    %c9_i32_38 = arith.constant 9 : i32
    %c0_i32_39 = arith.constant 0 : i32
    %68 = tpu.memref_slice %arg5[%c9_i32_38, %c0_i32_39] : memref<16x128xf32, #tpu.memory_space<vmem>> -> memref<1x128xf32, #tpu.memory_space<vmem>>
    %69 = tpu.memref_slice %arg6[%c0_i32_36] : memref<1x!tpu.dma_semaphore, #tpu.memory_space<semaphore_mem>> -> memref<1x!tpu.dma_semaphore, #tpu.memory_space<semaphore_mem>>
    %70 = tpu.memref_squeeze %69 : memref<1x!tpu.dma_semaphore, #tpu.memory_space<semaphore_mem>> -> memref<!tpu.dma_semaphore, #tpu.memory_space<semaphore_mem>>
    tpu.enqueue_dma source(%67 : memref<1x128xf32, #tpu.memory_space<any>>) target(%68 : memref<1x128xf32, #tpu.memory_space<vmem>>) target_semaphore(%70 : memref<!tpu.dma_semaphore, #tpu.memory_space<semaphore_mem>>)
    %c10_i32 = arith.constant 10 : i32
    %71 = arith.addi %0, %c10_i32 : i32
    %72 = arith.index_cast %71 : i32 to index
    %73 = memref.load %arg1[%72] : memref<16xi32, #tpu.memory_space<smem>>
    %c0_i32_40 = arith.constant 0 : i32
    %c0_i32_41 = arith.constant 0 : i32
    %74 = tpu.memref_slice %arg3[%73, %c0_i32_41] : memref<50x128xf32, #tpu.memory_space<any>> -> memref<1x128xf32, #tpu.memory_space<any>>
    %c10_i32_42 = arith.constant 10 : i32
    %c0_i32_43 = arith.constant 0 : i32
    %75 = tpu.memref_slice %arg5[%c10_i32_42, %c0_i32_43] : memref<16x128xf32, #tpu.memory_space<vmem>> -> memref<1x128xf32, #tpu.memory_space<vmem>>
    %76 = tpu.memref_slice %arg6[%c0_i32_40] : memref<1x!tpu.dma_semaphore, #tpu.memory_space<semaphore_mem>> -> memref<1x!tpu.dma_semaphore, #tpu.memory_space<semaphore_mem>>
    %77 = tpu.memref_squeeze %76 : memref<1x!tpu.dma_semaphore, #tpu.memory_space<semaphore_mem>> -> memref<!tpu.dma_semaphore, #tpu.memory_space<semaphore_mem>>
    tpu.enqueue_dma source(%74 : memref<1x128xf32, #tpu.memory_space<any>>) target(%75 : memref<1x128xf32, #tpu.memory_space<vmem>>) target_semaphore(%77 : memref<!tpu.dma_semaphore, #tpu.memory_space<semaphore_mem>>)
    %c11_i32 = arith.constant 11 : i32
    %78 = arith.addi %0, %c11_i32 : i32
    %79 = arith.index_cast %78 : i32 to index
    %80 = memref.load %arg1[%79] : memref<16xi32, #tpu.memory_space<smem>>
    %c0_i32_44 = arith.constant 0 : i32
    %c0_i32_45 = arith.constant 0 : i32
    %81 = tpu.memref_slice %arg3[%80, %c0_i32_45] : memref<50x128xf32, #tpu.memory_space<any>> -> memref<1x128xf32, #tpu.memory_space<any>>
    %c11_i32_46 = arith.constant 11 : i32
    %c0_i32_47 = arith.constant 0 : i32
    %82 = tpu.memref_slice %arg5[%c11_i32_46, %c0_i32_47] : memref<16x128xf32, #tpu.memory_space<vmem>> -> memref<1x128xf32, #tpu.memory_space<vmem>>
    %83 = tpu.memref_slice %arg6[%c0_i32_44] : memref<1x!tpu.dma_semaphore, #tpu.memory_space<semaphore_mem>> -> memref<1x!tpu.dma_semaphore, #tpu.memory_space<semaphore_mem>>
    %84 = tpu.memref_squeeze %83 : memref<1x!tpu.dma_semaphore, #tpu.memory_space<semaphore_mem>> -> memref<!tpu.dma_semaphore, #tpu.memory_space<semaphore_mem>>
    tpu.enqueue_dma source(%81 : memref<1x128xf32, #tpu.memory_space<any>>) target(%82 : memref<1x128xf32, #tpu.memory_space<vmem>>) target_semaphore(%84 : memref<!tpu.dma_semaphore, #tpu.memory_space<semaphore_mem>>)
    %c12_i32 = arith.constant 12 : i32
    %85 = arith.addi %0, %c12_i32 : i32
    %86 = arith.index_cast %85 : i32 to index
    %87 = memref.load %arg1[%86] : memref<16xi32, #tpu.memory_space<smem>>
    %c0_i32_48 = arith.constant 0 : i32
    %c0_i32_49 = arith.constant 0 : i32
    %88 = tpu.memref_slice %arg3[%87, %c0_i32_49] : memref<50x128xf32, #tpu.memory_space<any>> -> memref<1x128xf32, #tpu.memory_space<any>>
    %c12_i32_50 = arith.constant 12 : i32
    %c0_i32_51 = arith.constant 0 : i32
    %89 = tpu.memref_slice %arg5[%c12_i32_50, %c0_i32_51] : memref<16x128xf32, #tpu.memory_space<vmem>> -> memref<1x128xf32, #tpu.memory_space<vmem>>
    %90 = tpu.memref_slice %arg6[%c0_i32_48] : memref<1x!tpu.dma_semaphore, #tpu.memory_space<semaphore_mem>> -> memref<1x!tpu.dma_semaphore, #tpu.memory_space<semaphore_mem>>
    %91 = tpu.memref_squeeze %90 : memref<1x!tpu.dma_semaphore, #tpu.memory_space<semaphore_mem>> -> memref<!tpu.dma_semaphore, #tpu.memory_space<semaphore_mem>>
    tpu.enqueue_dma source(%88 : memref<1x128xf32, #tpu.memory_space<any>>) target(%89 : memref<1x128xf32, #tpu.memory_space<vmem>>) target_semaphore(%91 : memref<!tpu.dma_semaphore, #tpu.memory_space<semaphore_mem>>)
    %c13_i32 = arith.constant 13 : i32
    %92 = arith.addi %0, %c13_i32 : i32
    %93 = arith.index_cast %92 : i32 to index
    %94 = memref.load %arg1[%93] : memref<16xi32, #tpu.memory_space<smem>>
    %c0_i32_52 = arith.constant 0 : i32
    %c0_i32_53 = arith.constant 0 : i32
    %95 = tpu.memref_slice %arg3[%94, %c0_i32_53] : memref<50x128xf32, #tpu.memory_space<any>> -> memref<1x128xf32, #tpu.memory_space<any>>
    %c13_i32_54 = arith.constant 13 : i32
    %c0_i32_55 = arith.constant 0 : i32
    %96 = tpu.memref_slice %arg5[%c13_i32_54, %c0_i32_55] : memref<16x128xf32, #tpu.memory_space<vmem>> -> memref<1x128xf32, #tpu.memory_space<vmem>>
    %97 = tpu.memref_slice %arg6[%c0_i32_52] : memref<1x!tpu.dma_semaphore, #tpu.memory_space<semaphore_mem>> -> memref<1x!tpu.dma_semaphore, #tpu.memory_space<semaphore_mem>>
    %98 = tpu.memref_squeeze %97 : memref<1x!tpu.dma_semaphore, #tpu.memory_space<semaphore_mem>> -> memref<!tpu.dma_semaphore, #tpu.memory_space<semaphore_mem>>
    tpu.enqueue_dma source(%95 : memref<1x128xf32, #tpu.memory_space<any>>) target(%96 : memref<1x128xf32, #tpu.memory_space<vmem>>) target_semaphore(%98 : memref<!tpu.dma_semaphore, #tpu.memory_space<semaphore_mem>>)
    %c14_i32 = arith.constant 14 : i32
    %99 = arith.addi %0, %c14_i32 : i32
    %100 = arith.index_cast %99 : i32 to index
    %101 = memref.load %arg1[%100] : memref<16xi32, #tpu.memory_space<smem>>
    %c0_i32_56 = arith.constant 0 : i32
    %c0_i32_57 = arith.constant 0 : i32
    %102 = tpu.memref_slice %arg3[%101, %c0_i32_57] : memref<50x128xf32, #tpu.memory_space<any>> -> memref<1x128xf32, #tpu.memory_space<any>>
    %c14_i32_58 = arith.constant 14 : i32
    %c0_i32_59 = arith.constant 0 : i32
    %103 = tpu.memref_slice %arg5[%c14_i32_58, %c0_i32_59] : memref<16x128xf32, #tpu.memory_space<vmem>> -> memref<1x128xf32, #tpu.memory_space<vmem>>
    %104 = tpu.memref_slice %arg6[%c0_i32_56] : memref<1x!tpu.dma_semaphore, #tpu.memory_space<semaphore_mem>> -> memref<1x!tpu.dma_semaphore, #tpu.memory_space<semaphore_mem>>
    %105 = tpu.memref_squeeze %104 : memref<1x!tpu.dma_semaphore, #tpu.memory_space<semaphore_mem>> -> memref<!tpu.dma_semaphore, #tpu.memory_space<semaphore_mem>>
    tpu.enqueue_dma source(%102 : memref<1x128xf32, #tpu.memory_space<any>>) target(%103 : memref<1x128xf32, #tpu.memory_space<vmem>>) target_semaphore(%105 : memref<!tpu.dma_semaphore, #tpu.memory_space<semaphore_mem>>)
    %c15_i32 = arith.constant 15 : i32
    %106 = arith.addi %0, %c15_i32 : i32
    %107 = arith.index_cast %106 : i32 to index
    %108 = memref.load %arg1[%107] : memref<16xi32, #tpu.memory_space<smem>>
    %c0_i32_60 = arith.constant 0 : i32
    %c0_i32_61 = arith.constant 0 : i32
    %109 = tpu.memref_slice %arg3[%108, %c0_i32_61] : memref<50x128xf32, #tpu.memory_space<any>> -> memref<1x128xf32, #tpu.memory_space<any>>
    %c15_i32_62 = arith.constant 15 : i32
    %c0_i32_63 = arith.constant 0 : i32
    %110 = tpu.memref_slice %arg5[%c15_i32_62, %c0_i32_63] : memref<16x128xf32, #tpu.memory_space<vmem>> -> memref<1x128xf32, #tpu.memory_space<vmem>>
    %111 = tpu.memref_slice %arg6[%c0_i32_60] : memref<1x!tpu.dma_semaphore, #tpu.memory_space<semaphore_mem>> -> memref<1x!tpu.dma_semaphore, #tpu.memory_space<semaphore_mem>>
    %112 = tpu.memref_squeeze %111 : memref<1x!tpu.dma_semaphore, #tpu.memory_space<semaphore_mem>> -> memref<!tpu.dma_semaphore, #tpu.memory_space<semaphore_mem>>
    tpu.enqueue_dma source(%109 : memref<1x128xf32, #tpu.memory_space<any>>) target(%110 : memref<1x128xf32, #tpu.memory_space<vmem>>) target_semaphore(%112 : memref<!tpu.dma_semaphore, #tpu.memory_space<semaphore_mem>>)
    %c0_i32_64 = arith.constant 0 : i32
    %113 = arith.addi %0, %c0_i32_64 : i32
    %114 = arith.index_cast %113 : i32 to index
    %115 = memref.load %arg1[%114] : memref<16xi32, #tpu.memory_space<smem>>
    %c0_i32_65 = arith.constant 0 : i32
    %c0_i32_66 = arith.constant 0 : i32
    %116 = tpu.memref_slice %arg3[%115, %c0_i32_66] : memref<50x128xf32, #tpu.memory_space<any>> -> memref<1x128xf32, #tpu.memory_space<any>>
    %c0_i32_67 = arith.constant 0 : i32
    %c0_i32_68 = arith.constant 0 : i32
    %117 = tpu.memref_slice %arg5[%c0_i32_67, %c0_i32_68] : memref<16x128xf32, #tpu.memory_space<vmem>> -> memref<1x128xf32, #tpu.memory_space<vmem>>
    %118 = tpu.memref_slice %arg6[%c0_i32_65] : memref<1x!tpu.dma_semaphore, #tpu.memory_space<semaphore_mem>> -> memref<1x!tpu.dma_semaphore, #tpu.memory_space<semaphore_mem>>
    %119 = tpu.memref_squeeze %118 : memref<1x!tpu.dma_semaphore, #tpu.memory_space<semaphore_mem>> -> memref<!tpu.dma_semaphore, #tpu.memory_space<semaphore_mem>>
    tpu.wait_dma2 semaphore(%119 : memref<!tpu.dma_semaphore, #tpu.memory_space<semaphore_mem>>) src(%116 : memref<1x128xf32, #tpu.memory_space<any>>) dst(%117 : memref<1x128xf32, #tpu.memory_space<vmem>>)
    %c1_i32_69 = arith.constant 1 : i32
    %120 = arith.addi %0, %c1_i32_69 : i32
    %121 = arith.index_cast %120 : i32 to index
    %122 = memref.load %arg1[%121] : memref<16xi32, #tpu.memory_space<smem>>
    %c0_i32_70 = arith.constant 0 : i32
    %c0_i32_71 = arith.constant 0 : i32
    %123 = tpu.memref_slice %arg3[%122, %c0_i32_71] : memref<50x128xf32, #tpu.memory_space<any>> -> memref<1x128xf32, #tpu.memory_space<any>>
    %c1_i32_72 = arith.constant 1 : i32
    %c0_i32_73 = arith.constant 0 : i32
    %124 = tpu.memref_slice %arg5[%c1_i32_72, %c0_i32_73] : memref<16x128xf32, #tpu.memory_space<vmem>> -> memref<1x128xf32, #tpu.memory_space<vmem>>
    %125 = tpu.memref_slice %arg6[%c0_i32_70] : memref<1x!tpu.dma_semaphore, #tpu.memory_space<semaphore_mem>> -> memref<1x!tpu.dma_semaphore, #tpu.memory_space<semaphore_mem>>
    %126 = tpu.memref_squeeze %125 : memref<1x!tpu.dma_semaphore, #tpu.memory_space<semaphore_mem>> -> memref<!tpu.dma_semaphore, #tpu.memory_space<semaphore_mem>>
    tpu.wait_dma2 semaphore(%126 : memref<!tpu.dma_semaphore, #tpu.memory_space<semaphore_mem>>) src(%123 : memref<1x128xf32, #tpu.memory_space<any>>) dst(%124 : memref<1x128xf32, #tpu.memory_space<vmem>>)
    %c2_i32_74 = arith.constant 2 : i32
    %127 = arith.addi %0, %c2_i32_74 : i32
    %128 = arith.index_cast %127 : i32 to index
    %129 = memref.load %arg1[%128] : memref<16xi32, #tpu.memory_space<smem>>
    %c0_i32_75 = arith.constant 0 : i32
    %c0_i32_76 = arith.constant 0 : i32
    %130 = tpu.memref_slice %arg3[%129, %c0_i32_76] : memref<50x128xf32, #tpu.memory_space<any>> -> memref<1x128xf32, #tpu.memory_space<any>>
    %c2_i32_77 = arith.constant 2 : i32
    %c0_i32_78 = arith.constant 0 : i32
    %131 = tpu.memref_slice %arg5[%c2_i32_77, %c0_i32_78] : memref<16x128xf32, #tpu.memory_space<vmem>> -> memref<1x128xf32, #tpu.memory_space<vmem>>
    %132 = tpu.memref_slice %arg6[%c0_i32_75] : memref<1x!tpu.dma_semaphore, #tpu.memory_space<semaphore_mem>> -> memref<1x!tpu.dma_semaphore, #tpu.memory_space<semaphore_mem>>
    %133 = tpu.memref_squeeze %132 : memref<1x!tpu.dma_semaphore, #tpu.memory_space<semaphore_mem>> -> memref<!tpu.dma_semaphore, #tpu.memory_space<semaphore_mem>>
    tpu.wait_dma2 semaphore(%133 : memref<!tpu.dma_semaphore, #tpu.memory_space<semaphore_mem>>) src(%130 : memref<1x128xf32, #tpu.memory_space<any>>) dst(%131 : memref<1x128xf32, #tpu.memory_space<vmem>>)
    %c3_i32_79 = arith.constant 3 : i32
    %134 = arith.addi %0, %c3_i32_79 : i32
    %135 = arith.index_cast %134 : i32 to index
    %136 = memref.load %arg1[%135] : memref<16xi32, #tpu.memory_space<smem>>
    %c0_i32_80 = arith.constant 0 : i32
    %c0_i32_81 = arith.constant 0 : i32
    %137 = tpu.memref_slice %arg3[%136, %c0_i32_81] : memref<50x128xf32, #tpu.memory_space<any>> -> memref<1x128xf32, #tpu.memory_space<any>>
    %c3_i32_82 = arith.constant 3 : i32
    %c0_i32_83 = arith.constant 0 : i32
    %138 = tpu.memref_slice %arg5[%c3_i32_82, %c0_i32_83] : memref<16x128xf32, #tpu.memory_space<vmem>> -> memref<1x128xf32, #tpu.memory_space<vmem>>
    %139 = tpu.memref_slice %arg6[%c0_i32_80] : memref<1x!tpu.dma_semaphore, #tpu.memory_space<semaphore_mem>> -> memref<1x!tpu.dma_semaphore, #tpu.memory_space<semaphore_mem>>
    %140 = tpu.memref_squeeze %139 : memref<1x!tpu.dma_semaphore, #tpu.memory_space<semaphore_mem>> -> memref<!tpu.dma_semaphore, #tpu.memory_space<semaphore_mem>>
    tpu.wait_dma2 semaphore(%140 : memref<!tpu.dma_semaphore, #tpu.memory_space<semaphore_mem>>) src(%137 : memref<1x128xf32, #tpu.memory_space<any>>) dst(%138 : memref<1x128xf32, #tpu.memory_space<vmem>>)
    %c4_i32_84 = arith.constant 4 : i32
    %141 = arith.addi %0, %c4_i32_84 : i32
    %142 = arith.index_cast %141 : i32 to index
    %143 = memref.load %arg1[%142] : memref<16xi32, #tpu.memory_space<smem>>
    %c0_i32_85 = arith.constant 0 : i32
    %c0_i32_86 = arith.constant 0 : i32
    %144 = tpu.memref_slice %arg3[%143, %c0_i32_86] : memref<50x128xf32, #tpu.memory_space<any>> -> memref<1x128xf32, #tpu.memory_space<any>>
    %c4_i32_87 = arith.constant 4 : i32
    %c0_i32_88 = arith.constant 0 : i32
    %145 = tpu.memref_slice %arg5[%c4_i32_87, %c0_i32_88] : memref<16x128xf32, #tpu.memory_space<vmem>> -> memref<1x128xf32, #tpu.memory_space<vmem>>
    %146 = tpu.memref_slice %arg6[%c0_i32_85] : memref<1x!tpu.dma_semaphore, #tpu.memory_space<semaphore_mem>> -> memref<1x!tpu.dma_semaphore, #tpu.memory_space<semaphore_mem>>
    %147 = tpu.memref_squeeze %146 : memref<1x!tpu.dma_semaphore, #tpu.memory_space<semaphore_mem>> -> memref<!tpu.dma_semaphore, #tpu.memory_space<semaphore_mem>>
    tpu.wait_dma2 semaphore(%147 : memref<!tpu.dma_semaphore, #tpu.memory_space<semaphore_mem>>) src(%144 : memref<1x128xf32, #tpu.memory_space<any>>) dst(%145 : memref<1x128xf32, #tpu.memory_space<vmem>>)
    %c5_i32_89 = arith.constant 5 : i32
    %148 = arith.addi %0, %c5_i32_89 : i32
    %149 = arith.index_cast %148 : i32 to index
    %150 = memref.load %arg1[%149] : memref<16xi32, #tpu.memory_space<smem>>
    %c0_i32_90 = arith.constant 0 : i32
    %c0_i32_91 = arith.constant 0 : i32
    %151 = tpu.memref_slice %arg3[%150, %c0_i32_91] : memref<50x128xf32, #tpu.memory_space<any>> -> memref<1x128xf32, #tpu.memory_space<any>>
    %c5_i32_92 = arith.constant 5 : i32
    %c0_i32_93 = arith.constant 0 : i32
    %152 = tpu.memref_slice %arg5[%c5_i32_92, %c0_i32_93] : memref<16x128xf32, #tpu.memory_space<vmem>> -> memref<1x128xf32, #tpu.memory_space<vmem>>
    %153 = tpu.memref_slice %arg6[%c0_i32_90] : memref<1x!tpu.dma_semaphore, #tpu.memory_space<semaphore_mem>> -> memref<1x!tpu.dma_semaphore, #tpu.memory_space<semaphore_mem>>
    %154 = tpu.memref_squeeze %153 : memref<1x!tpu.dma_semaphore, #tpu.memory_space<semaphore_mem>> -> memref<!tpu.dma_semaphore, #tpu.memory_space<semaphore_mem>>
    tpu.wait_dma2 semaphore(%154 : memref<!tpu.dma_semaphore, #tpu.memory_space<semaphore_mem>>) src(%151 : memref<1x128xf32, #tpu.memory_space<any>>) dst(%152 : memref<1x128xf32, #tpu.memory_space<vmem>>)
    %c6_i32_94 = arith.constant 6 : i32
    %155 = arith.addi %0, %c6_i32_94 : i32
    %156 = arith.index_cast %155 : i32 to index
    %157 = memref.load %arg1[%156] : memref<16xi32, #tpu.memory_space<smem>>
    %c0_i32_95 = arith.constant 0 : i32
    %c0_i32_96 = arith.constant 0 : i32
    %158 = tpu.memref_slice %arg3[%157, %c0_i32_96] : memref<50x128xf32, #tpu.memory_space<any>> -> memref<1x128xf32, #tpu.memory_space<any>>
    %c6_i32_97 = arith.constant 6 : i32
    %c0_i32_98 = arith.constant 0 : i32
    %159 = tpu.memref_slice %arg5[%c6_i32_97, %c0_i32_98] : memref<16x128xf32, #tpu.memory_space<vmem>> -> memref<1x128xf32, #tpu.memory_space<vmem>>
    %160 = tpu.memref_slice %arg6[%c0_i32_95] : memref<1x!tpu.dma_semaphore, #tpu.memory_space<semaphore_mem>> -> memref<1x!tpu.dma_semaphore, #tpu.memory_space<semaphore_mem>>
    %161 = tpu.memref_squeeze %160 : memref<1x!tpu.dma_semaphore, #tpu.memory_space<semaphore_mem>> -> memref<!tpu.dma_semaphore, #tpu.memory_space<semaphore_mem>>
    tpu.wait_dma2 semaphore(%161 : memref<!tpu.dma_semaphore, #tpu.memory_space<semaphore_mem>>) src(%158 : memref<1x128xf32, #tpu.memory_space<any>>) dst(%159 : memref<1x128xf32, #tpu.memory_space<vmem>>)
    %c7_i32_99 = arith.constant 7 : i32
    %162 = arith.addi %0, %c7_i32_99 : i32
    %163 = arith.index_cast %162 : i32 to index
    %164 = memref.load %arg1[%163] : memref<16xi32, #tpu.memory_space<smem>>
    %c0_i32_100 = arith.constant 0 : i32
    %c0_i32_101 = arith.constant 0 : i32
    %165 = tpu.memref_slice %arg3[%164, %c0_i32_101] : memref<50x128xf32, #tpu.memory_space<any>> -> memref<1x128xf32, #tpu.memory_space<any>>
    %c7_i32_102 = arith.constant 7 : i32
    %c0_i32_103 = arith.constant 0 : i32
    %166 = tpu.memref_slice %arg5[%c7_i32_102, %c0_i32_103] : memref<16x128xf32, #tpu.memory_space<vmem>> -> memref<1x128xf32, #tpu.memory_space<vmem>>
    %167 = tpu.memref_slice %arg6[%c0_i32_100] : memref<1x!tpu.dma_semaphore, #tpu.memory_space<semaphore_mem>> -> memref<1x!tpu.dma_semaphore, #tpu.memory_space<semaphore_mem>>
    %168 = tpu.memref_squeeze %167 : memref<1x!tpu.dma_semaphore, #tpu.memory_space<semaphore_mem>> -> memref<!tpu.dma_semaphore, #tpu.memory_space<semaphore_mem>>
    tpu.wait_dma2 semaphore(%168 : memref<!tpu.dma_semaphore, #tpu.memory_space<semaphore_mem>>) src(%165 : memref<1x128xf32, #tpu.memory_space<any>>) dst(%166 : memref<1x128xf32, #tpu.memory_space<vmem>>)
    %c8_i32_104 = arith.constant 8 : i32
    %169 = arith.addi %0, %c8_i32_104 : i32
    %170 = arith.index_cast %169 : i32 to index
    %171 = memref.load %arg1[%170] : memref<16xi32, #tpu.memory_space<smem>>
    %c0_i32_105 = arith.constant 0 : i32
    %c0_i32_106 = arith.constant 0 : i32
    %172 = tpu.memref_slice %arg3[%171, %c0_i32_106] : memref<50x128xf32, #tpu.memory_space<any>> -> memref<1x128xf32, #tpu.memory_space<any>>
    %c8_i32_107 = arith.constant 8 : i32
    %c0_i32_108 = arith.constant 0 : i32
    %173 = tpu.memref_slice %arg5[%c8_i32_107, %c0_i32_108] : memref<16x128xf32, #tpu.memory_space<vmem>> -> memref<1x128xf32, #tpu.memory_space<vmem>>
    %174 = tpu.memref_slice %arg6[%c0_i32_105] : memref<1x!tpu.dma_semaphore, #tpu.memory_space<semaphore_mem>> -> memref<1x!tpu.dma_semaphore, #tpu.memory_space<semaphore_mem>>
    %175 = tpu.memref_squeeze %174 : memref<1x!tpu.dma_semaphore, #tpu.memory_space<semaphore_mem>> -> memref<!tpu.dma_semaphore, #tpu.memory_space<semaphore_mem>>
    tpu.wait_dma2 semaphore(%175 : memref<!tpu.dma_semaphore, #tpu.memory_space<semaphore_mem>>) src(%172 : memref<1x128xf32, #tpu.memory_space<any>>) dst(%173 : memref<1x128xf32, #tpu.memory_space<vmem>>)
    %c9_i32_109 = arith.constant 9 : i32
    %176 = arith.addi %0, %c9_i32_109 : i32
    %177 = arith.index_cast %176 : i32 to index
    %178 = memref.load %arg1[%177] : memref<16xi32, #tpu.memory_space<smem>>
    %c0_i32_110 = arith.constant 0 : i32
    %c0_i32_111 = arith.constant 0 : i32
    %179 = tpu.memref_slice %arg3[%178, %c0_i32_111] : memref<50x128xf32, #tpu.memory_space<any>> -> memref<1x128xf32, #tpu.memory_space<any>>
    %c9_i32_112 = arith.constant 9 : i32
    %c0_i32_113 = arith.constant 0 : i32
    %180 = tpu.memref_slice %arg5[%c9_i32_112, %c0_i32_113] : memref<16x128xf32, #tpu.memory_space<vmem>> -> memref<1x128xf32, #tpu.memory_space<vmem>>
    %181 = tpu.memref_slice %arg6[%c0_i32_110] : memref<1x!tpu.dma_semaphore, #tpu.memory_space<semaphore_mem>> -> memref<1x!tpu.dma_semaphore, #tpu.memory_space<semaphore_mem>>
    %182 = tpu.memref_squeeze %181 : memref<1x!tpu.dma_semaphore, #tpu.memory_space<semaphore_mem>> -> memref<!tpu.dma_semaphore, #tpu.memory_space<semaphore_mem>>
    tpu.wait_dma2 semaphore(%182 : memref<!tpu.dma_semaphore, #tpu.memory_space<semaphore_mem>>) src(%179 : memref<1x128xf32, #tpu.memory_space<any>>) dst(%180 : memref<1x128xf32, #tpu.memory_space<vmem>>)
    %c10_i32_114 = arith.constant 10 : i32
    %183 = arith.addi %0, %c10_i32_114 : i32
    %184 = arith.index_cast %183 : i32 to index
    %185 = memref.load %arg1[%184] : memref<16xi32, #tpu.memory_space<smem>>
    %c0_i32_115 = arith.constant 0 : i32
    %c0_i32_116 = arith.constant 0 : i32
    %186 = tpu.memref_slice %arg3[%185, %c0_i32_116] : memref<50x128xf32, #tpu.memory_space<any>> -> memref<1x128xf32, #tpu.memory_space<any>>
    %c10_i32_117 = arith.constant 10 : i32
    %c0_i32_118 = arith.constant 0 : i32
    %187 = tpu.memref_slice %arg5[%c10_i32_117, %c0_i32_118] : memref<16x128xf32, #tpu.memory_space<vmem>> -> memref<1x128xf32, #tpu.memory_space<vmem>>
    %188 = tpu.memref_slice %arg6[%c0_i32_115] : memref<1x!tpu.dma_semaphore, #tpu.memory_space<semaphore_mem>> -> memref<1x!tpu.dma_semaphore, #tpu.memory_space<semaphore_mem>>
    %189 = tpu.memref_squeeze %188 : memref<1x!tpu.dma_semaphore, #tpu.memory_space<semaphore_mem>> -> memref<!tpu.dma_semaphore, #tpu.memory_space<semaphore_mem>>
    tpu.wait_dma2 semaphore(%189 : memref<!tpu.dma_semaphore, #tpu.memory_space<semaphore_mem>>) src(%186 : memref<1x128xf32, #tpu.memory_space<any>>) dst(%187 : memref<1x128xf32, #tpu.memory_space<vmem>>)
    %c11_i32_119 = arith.constant 11 : i32
    %190 = arith.addi %0, %c11_i32_119 : i32
    %191 = arith.index_cast %190 : i32 to index
    %192 = memref.load %arg1[%191] : memref<16xi32, #tpu.memory_space<smem>>
    %c0_i32_120 = arith.constant 0 : i32
    %c0_i32_121 = arith.constant 0 : i32
    %193 = tpu.memref_slice %arg3[%192, %c0_i32_121] : memref<50x128xf32, #tpu.memory_space<any>> -> memref<1x128xf32, #tpu.memory_space<any>>
    %c11_i32_122 = arith.constant 11 : i32
    %c0_i32_123 = arith.constant 0 : i32
    %194 = tpu.memref_slice %arg5[%c11_i32_122, %c0_i32_123] : memref<16x128xf32, #tpu.memory_space<vmem>> -> memref<1x128xf32, #tpu.memory_space<vmem>>
    %195 = tpu.memref_slice %arg6[%c0_i32_120] : memref<1x!tpu.dma_semaphore, #tpu.memory_space<semaphore_mem>> -> memref<1x!tpu.dma_semaphore, #tpu.memory_space<semaphore_mem>>
    %196 = tpu.memref_squeeze %195 : memref<1x!tpu.dma_semaphore, #tpu.memory_space<semaphore_mem>> -> memref<!tpu.dma_semaphore, #tpu.memory_space<semaphore_mem>>
    tpu.wait_dma2 semaphore(%196 : memref<!tpu.dma_semaphore, #tpu.memory_space<semaphore_mem>>) src(%193 : memref<1x128xf32, #tpu.memory_space<any>>) dst(%194 : memref<1x128xf32, #tpu.memory_space<vmem>>)
    %c12_i32_124 = arith.constant 12 : i32
    %197 = arith.addi %0, %c12_i32_124 : i32
    %198 = arith.index_cast %197 : i32 to index
    %199 = memref.load %arg1[%198] : memref<16xi32, #tpu.memory_space<smem>>
    %c0_i32_125 = arith.constant 0 : i32
    %c0_i32_126 = arith.constant 0 : i32
    %200 = tpu.memref_slice %arg3[%199, %c0_i32_126] : memref<50x128xf32, #tpu.memory_space<any>> -> memref<1x128xf32, #tpu.memory_space<any>>
    %c12_i32_127 = arith.constant 12 : i32
    %c0_i32_128 = arith.constant 0 : i32
    %201 = tpu.memref_slice %arg5[%c12_i32_127, %c0_i32_128] : memref<16x128xf32, #tpu.memory_space<vmem>> -> memref<1x128xf32, #tpu.memory_space<vmem>>
    %202 = tpu.memref_slice %arg6[%c0_i32_125] : memref<1x!tpu.dma_semaphore, #tpu.memory_space<semaphore_mem>> -> memref<1x!tpu.dma_semaphore, #tpu.memory_space<semaphore_mem>>
    %203 = tpu.memref_squeeze %202 : memref<1x!tpu.dma_semaphore, #tpu.memory_space<semaphore_mem>> -> memref<!tpu.dma_semaphore, #tpu.memory_space<semaphore_mem>>
    tpu.wait_dma2 semaphore(%203 : memref<!tpu.dma_semaphore, #tpu.memory_space<semaphore_mem>>) src(%200 : memref<1x128xf32, #tpu.memory_space<any>>) dst(%201 : memref<1x128xf32, #tpu.memory_space<vmem>>)
    %c13_i32_129 = arith.constant 13 : i32
    %204 = arith.addi %0, %c13_i32_129 : i32
    %205 = arith.index_cast %204 : i32 to index
    %206 = memref.load %arg1[%205] : memref<16xi32, #tpu.memory_space<smem>>
    %c0_i32_130 = arith.constant 0 : i32
    %c0_i32_131 = arith.constant 0 : i32
    %207 = tpu.memref_slice %arg3[%206, %c0_i32_131] : memref<50x128xf32, #tpu.memory_space<any>> -> memref<1x128xf32, #tpu.memory_space<any>>
    %c13_i32_132 = arith.constant 13 : i32
    %c0_i32_133 = arith.constant 0 : i32
    %208 = tpu.memref_slice %arg5[%c13_i32_132, %c0_i32_133] : memref<16x128xf32, #tpu.memory_space<vmem>> -> memref<1x128xf32, #tpu.memory_space<vmem>>
    %209 = tpu.memref_slice %arg6[%c0_i32_130] : memref<1x!tpu.dma_semaphore, #tpu.memory_space<semaphore_mem>> -> memref<1x!tpu.dma_semaphore, #tpu.memory_space<semaphore_mem>>
    %210 = tpu.memref_squeeze %209 : memref<1x!tpu.dma_semaphore, #tpu.memory_space<semaphore_mem>> -> memref<!tpu.dma_semaphore, #tpu.memory_space<semaphore_mem>>
    tpu.wait_dma2 semaphore(%210 : memref<!tpu.dma_semaphore, #tpu.memory_space<semaphore_mem>>) src(%207 : memref<1x128xf32, #tpu.memory_space<any>>) dst(%208 : memref<1x128xf32, #tpu.memory_space<vmem>>)
    %c14_i32_134 = arith.constant 14 : i32
    %211 = arith.addi %0, %c14_i32_134 : i32
    %212 = arith.index_cast %211 : i32 to index
    %213 = memref.load %arg1[%212] : memref<16xi32, #tpu.memory_space<smem>>
    %c0_i32_135 = arith.constant 0 : i32
    %c0_i32_136 = arith.constant 0 : i32
    %214 = tpu.memref_slice %arg3[%213, %c0_i32_136] : memref<50x128xf32, #tpu.memory_space<any>> -> memref<1x128xf32, #tpu.memory_space<any>>
    %c14_i32_137 = arith.constant 14 : i32
    %c0_i32_138 = arith.constant 0 : i32
    %215 = tpu.memref_slice %arg5[%c14_i32_137, %c0_i32_138] : memref<16x128xf32, #tpu.memory_space<vmem>> -> memref<1x128xf32, #tpu.memory_space<vmem>>
    %216 = tpu.memref_slice %arg6[%c0_i32_135] : memref<1x!tpu.dma_semaphore, #tpu.memory_space<semaphore_mem>> -> memref<1x!tpu.dma_semaphore, #tpu.memory_space<semaphore_mem>>
    %217 = tpu.memref_squeeze %216 : memref<1x!tpu.dma_semaphore, #tpu.memory_space<semaphore_mem>> -> memref<!tpu.dma_semaphore, #tpu.memory_space<semaphore_mem>>
    tpu.wait_dma2 semaphore(%217 : memref<!tpu.dma_semaphore, #tpu.memory_space<semaphore_mem>>) src(%214 : memref<1x128xf32, #tpu.memory_space<any>>) dst(%215 : memref<1x128xf32, #tpu.memory_space<vmem>>)
    %c15_i32_139 = arith.constant 15 : i32
    %218 = arith.addi %0, %c15_i32_139 : i32
    %219 = arith.index_cast %218 : i32 to index
    %220 = memref.load %arg1[%219] : memref<16xi32, #tpu.memory_space<smem>>
    %c0_i32_140 = arith.constant 0 : i32
    %c0_i32_141 = arith.constant 0 : i32
    %221 = tpu.memref_slice %arg3[%220, %c0_i32_141] : memref<50x128xf32, #tpu.memory_space<any>> -> memref<1x128xf32, #tpu.memory_space<any>>
    %c15_i32_142 = arith.constant 15 : i32
    %c0_i32_143 = arith.constant 0 : i32
    %222 = tpu.memref_slice %arg5[%c15_i32_142, %c0_i32_143] : memref<16x128xf32, #tpu.memory_space<vmem>> -> memref<1x128xf32, #tpu.memory_space<vmem>>
    %223 = tpu.memref_slice %arg6[%c0_i32_140] : memref<1x!tpu.dma_semaphore, #tpu.memory_space<semaphore_mem>> -> memref<1x!tpu.dma_semaphore, #tpu.memory_space<semaphore_mem>>
    %224 = tpu.memref_squeeze %223 : memref<1x!tpu.dma_semaphore, #tpu.memory_space<semaphore_mem>> -> memref<!tpu.dma_semaphore, #tpu.memory_space<semaphore_mem>>
    tpu.wait_dma2 semaphore(%224 : memref<!tpu.dma_semaphore, #tpu.memory_space<semaphore_mem>>) src(%221 : memref<1x128xf32, #tpu.memory_space<any>>) dst(%222 : memref<1x128xf32, #tpu.memory_space<vmem>>)
    %c0 = arith.constant 0 : index
    %c0_144 = arith.constant 0 : index
    %225 = vector.load %arg5[%c0, %c0_144] : memref<16x128xf32, #tpu.memory_space<vmem>>, vector<16x128xf32>
    %cst = arith.constant 5.65685415 : f32
    %226 = vector.broadcast %cst : f32 to vector<16x128xf32>
    %227 = arith.mulf %225, %226 : vector<16x128xf32>
    %228 = vector.shape_cast %227 : vector<16x128xf32> to vector<2x8x128xf32>
    %c0_145 = arith.constant 0 : index
    %c0_146 = arith.constant 0 : index
    %229 = vector.load %arg2[%c0_145, %c0_146] : memref<8x128xf32, #tpu.memory_space<vmem>>, vector<8x128xf32>
    %230 = vector.shape_cast %229 : vector<8x128xf32> to vector<1x8x128xf32>
    %231 = vector.broadcast %230 : vector<1x8x128xf32> to vector<2x8x128xf32>
    %232 = arith.addf %228, %231 : vector<2x8x128xf32>
    %233 = vector.shape_cast %232 : vector<2x8x128xf32> to vector<16x128xf32>
    %c0_147 = arith.constant 0 : index
    %c0_148 = arith.constant 0 : index
    %234 = vector.load %arg4[%c0_147, %c0_148] : memref<16x128xf32, #tpu.memory_space<vmem>>, vector<16x128xf32>
    tpu.vector_store %arg4[%c0_147, %c0_148], %233 {strides = array<i32>} : memref<16x128xf32, #tpu.memory_space<vmem>>, vector<16x128xf32>,
    return
  }
  func.func @transform_0(%arg0: i32, %arg1: memref<16xi32, #tpu.memory_space<smem>>) -> (i32, i32) {
    %c0_i32 = arith.constant 0 : i32
    %c0_i32_0 = arith.constant 0 : i32
    %c0_i32_1 = arith.constant 0 : i32
    return %c0_i32, %c0_i32_0 : i32, i32
  }
  func.func @transform_2(%arg0: i32, %arg1: memref<16xi32, #tpu.memory_space<smem>>) -> (i32, i32) {
    %c0_i32 = arith.constant 0 : i32
    %c0_i32_0 = arith.constant 0 : i32
    return %arg0, %c0_i32 : i32, i32
  }
}

</mosaic_0001>

<bundles_post_ra>
// kernel: tpu_custom_call.1
= control target key start
LH: loop header
LB: loop body
LE: loop exit
PB: predicated region body
PF: predicated region fallthrough
CT: control target
= control target key end

     0   :  { %s892_s15 = smov [#allocation5]   ;;  %s1116_s0 = inlined_call_operand.hbm [shape: s32[16], index: 0, kind: input, shape index: {}]   ;;  %s1117_s1 = inlined_call_operand.hbm [shape: f32[8,128], index: 1, kind: input, shape index: {}]   ;;  %s1118_s2 = inlined_call_operand.hbm [shape: f32[50,128], index: 2, kind: input, shape index: {}]   ;;  %s1119_s3 = inlined_call_operand.hbm [shape: f32[16,128], index: 3, kind: output, shape index: {}]  }
   0x1   :  { %s9_s14 = sshll.u32 %s1116_s0, 4  ;;  %s10_s14 = int_to_ptr.hbm [resolvable:$true] %s9_s14 }
   0x2   :  { %12 = dma.hbm_to_smem %s10_s14, 16, %s892_s15, [#allocation4] }
   0x3   :  { %884 = dma.done.wait [#allocation4], 16 }
   0x4   :  { %885 = vsyncadd [#allocation4], 4294967280 }
   0x5   :  { %15 = sfence }
   0x6   :  { %16 = vsyncpa [#allocation7], 0 }
   0x7   :  { %17 = vsyncpa [#allocation8], 0  ;;  %s23_s18 = sshll.u32 %s1117_s1, 4  ;;  %s893_s19 = smov [#allocation6]   ;;  %s24_s18 = int_to_ptr.hbm [resolvable:$true] %s23_s18 }
   0x8   :  { %s25_s20 = sshll.u32 %s893_s19, 4  ;;  %s26_s20 = int_to_ptr.vmem [resolvable:$true] %s25_s20 }
   0x9   :  { %28 = dma.hbm_to_vmem [thread:$0]  %s24_s18, 128, %s26_s20, [#allocation7]  }
   0xa   :  { %886 = dma.done.wait [#allocation7], 128  }
   0xb   :  { %887 = vsyncadd [#allocation7], 4294967168  ;;  %s34_s0 = sld [smem:[#allocation5]]  ;;  %s894_s21 = smov [#allocation2]  }
   0xc   :  { %s939_s22 = sshll.u32 %s894_s21, 4  ;;  %s403_s23 = sld [smem:[#allocation5 + $0x1]]  ;;  %s46_s22 = int_to_ptr.vmem [resolvable:$true] %s939_s22 }
   0xd   :  { %s895_s24 = smov [#allocation2 + $0x1]   ;;  %s944_s26 = sld [smem:[#allocation5 + $0x2]] }
   0xe   :  { %s942_s25 = sshll.u32 %s895_s24, 4  ;;  %s896_s1 = smov [#allocation2 + $0x2]   ;;  %s63_s25 = int_to_ptr.vmem [resolvable:$true] %s942_s25 }
   0xf   :  { %s947_s27 = sshll.u32 %s896_s1, 4  ;;  %s949_s28 = sld [smem:[#allocation5 + $0x3]]  ;;  %s80_s27 = int_to_ptr.vmem [resolvable:$true] %s947_s27 }
  0x10   :  { %s897_s5 = smov [#allocation2 + $0x3]   ;;  %s963_s16 = scalar_lea.hbm %s1118_s2, 56 }
  0x11   :  { %s35_s4 = scalar_lea.hbm %s1118_s2, %s34_s0  ;;  %s955_s6 = sshll.u32 %s897_s5, 4  ;;  %s97_s6 = int_to_ptr.vmem [resolvable:$true] %s955_s6 }
  0x12   :  { %s43_s7 = sshll.u32 %s35_s4, 4  ;;  %s51_s10 = scalar_lea.hbm %s1118_s2, %s403_s23  ;;  %s44_s7 = int_to_ptr.hbm [resolvable:$true] %s43_s7 }
  0x13   :  { %s60_s11 = sshll.u32 %s51_s10, 4  ;;  %s476_s12 = sshra.s32 %s44_s7, 4  ;;  %s477_s12 = int_to_ptr.hbm [resolvable:$true] %s476_s12  ;;  %s61_s11 = int_to_ptr.hbm [resolvable:$true] %s60_s11 }
  0x14   :  { %s478_s13 = scalar_lea.hbm %s477_s12, 1  ;;  %p481_p1 = scmp.lt.s32.totalorder %s477_s12, %s1118_s2 }
  0x15   :  { %p479_p0 = scmp.ne.s32.totalorder %s477_s12, %s478_s13  ;;  %p482_p2 = scmp.lt.s32.totalorder %s963_s16, %s478_s13 }
  0x17   :  { %p483_p3 = por %p482_p2, %p481_p1 }
  0x19   :  { %p484_p4 = pnand %p483_p3, %p479_p0 }
  0x1b   :  { %487 = shalt.err (!%p484_p4)  }
  0x1c   :  { %48 = dma.hbm_to_vmem [thread:$0]  %s44_s7, 16, %s46_s22, [#allocation3] }
  0x1d   :  { %s68_s0 = scalar_lea.hbm %s1118_s2, %s944_s26  ;;  %s500_s21 = sshra.s32 %s61_s11, 4  ;;  %s501_s21 = int_to_ptr.hbm [resolvable:$true] %s500_s21 }
  0x1e   :  { %s502_s23 = scalar_lea.hbm %s501_s21, 1  ;;  %p505_p6 = scmp.lt.s32.totalorder %s501_s21, %s1118_s2 }
  0x1f   :  { %p503_p5 = scmp.ne.s32.totalorder %s501_s21, %s502_s23  ;;  %p506_p7 = scmp.lt.s32.totalorder %s963_s16, %s502_s23 }
  0x21   :  { %p507_p8 = por %p506_p7, %p505_p6 }
  0x23   :  { %p508_p9 = pnand %p507_p8, %p503_p5 }
  0x25   :  { %511 = shalt.err (!%p508_p9)  }
  0x26   :  { %65 = dma.hbm_to_vmem [thread:$0]  %s61_s11, 16, %s63_s25, [#allocation3] }
  0x27   :  { %s77_s22 = sshll.u32 %s68_s0, 4  ;;  %s85_s30 = scalar_lea.hbm %s1118_s2, %s949_s28  ;;  %s78_s22 = int_to_ptr.hbm [resolvable:$true] %s77_s22 }
  0x28   :  { %s94_s4 = sshll.u32 %s85_s30, 4  ;;  %s524_s5 = sshra.s32 %s78_s22, 4  ;;  %s525_s5 = int_to_ptr.hbm [resolvable:$true] %s524_s5  ;;  %s95_s4 = int_to_ptr.hbm [resolvable:$true] %s94_s4 }
  0x29   :  { %s526_s7 = scalar_lea.hbm %s525_s5, 1  ;;  %p529_p11 = scmp.lt.s32.totalorder %s525_s5, %s1118_s2 }
  0x2a   :  { %p527_p10 = scmp.ne.s32.totalorder %s525_s5, %s526_s7  ;;  %p530_p12 = scmp.lt.s32.totalorder %s963_s16, %s526_s7 }
  0x2c   :  { %p531_p13 = por %p530_p12, %p529_p11 }
  0x2e   :  { %p532_p0 = pnand %p531_p13, %p527_p10 }
  0x30   :  { %535 = shalt.err (!%p532_p0)  }
  0x31   :  { %82 = dma.hbm_to_vmem [thread:$0]  %s78_s22, 16, %s80_s27, [#allocation3] }
  0x32   :  { %s548_s25 = sshra.s32 %s95_s4, 4  ;;  %s549_s25 = int_to_ptr.hbm [resolvable:$true] %s548_s25 }
  0x33   :  { %s550_s28 = scalar_lea.hbm %s549_s25, 1  ;;  %p553_p2 = scmp.lt.s32.totalorder %s549_s25, %s1118_s2 }
  0x34   :  { %p551_p1 = scmp.ne.s32.totalorder %s549_s25, %s550_s28  ;;  %p554_p3 = scmp.lt.s32.totalorder %s963_s16, %s550_s28 }
  0x36   :  { %p555_p4 = por %p554_p3, %p553_p2 }
  0x38   :  { %p556_p5 = pnand %p555_p4, %p551_p1 }
  0x3a   :  { %559 = shalt.err (!%p556_p5)  }
  0x3b   :  { %99 = dma.hbm_to_vmem [thread:$0]  %s95_s4, 16, %s97_s6, [#allocation3] }
  0x3c   :  { %s406_s12 = sld [smem:[#allocation5 + $0x4]]  ;;  %s898_s13 = smov [#allocation2 + $0x4]  }
  0x3d   :  { %s113_s14 = sshll.u32 %s898_s13, 4  ;;  %s407_s15 = sld [smem:[#allocation5 + $0x5]]  ;;  %s114_s14 = int_to_ptr.vmem [resolvable:$true] %s113_s14 }
  0x3e   :  { %s899_s27 = smov [#allocation2 + $0x5]   ;;  %s996_s18 = sld [smem:[#allocation5 + $0x6]] }
  0x3f   :  { %s994_s17 = sshll.u32 %s899_s27, 4  ;;  %s900_s19 = smov [#allocation2 + $0x6]   ;;  %s131_s17 = int_to_ptr.vmem [resolvable:$true] %s994_s17 }
  0x40   :  { %s999_s20 = sshll.u32 %s900_s19, 4  ;;  %s1001_s0 = sld [smem:[#allocation5 + $0x7]]  ;;  %s148_s20 = int_to_ptr.vmem [resolvable:$true] %s999_s20 }
  0x42   :  { %s102_s23 = scalar_lea.hbm %s1118_s2, %s406_s12 }
  0x43   :  { %s111_s24 = sshll.u32 %s102_s23, 4  ;;  %s119_s29 = scalar_lea.hbm %s1118_s2, %s407_s15  ;;  %s112_s24 = int_to_ptr.hbm [resolvable:$true] %s111_s24 }
  0x44   :  { %s128_s26 = sshll.u32 %s119_s29, 4  ;;  %s572_s30 = sshra.s32 %s112_s24, 4  ;;  %s573_s30 = int_to_ptr.hbm [resolvable:$true] %s572_s30  ;;  %s129_s26 = int_to_ptr.hbm [resolvable:$true] %s128_s26 }
  0x45   :  { %s574_s4 = scalar_lea.hbm %s573_s30, 1  ;;  %p577_p7 = scmp.lt.s32.totalorder %s573_s30, %s1118_s2 }
  0x46   :  { %p575_p6 = scmp.ne.s32.totalorder %s573_s30, %s574_s4  ;;  %p578_p8 = scmp.lt.s32.totalorder %s963_s16, %s574_s4 }
  0x48   :  { %p579_p9 = por %p578_p8, %p577_p7 }
  0x4a   :  { %p580_p10 = pnand %p579_p9, %p575_p6 }
  0x4c   :  { %583 = shalt.err (!%p580_p10)  }
  0x4d   :  { %116 = dma.hbm_to_vmem [thread:$0]  %s112_s24, 16, %s114_s14, [#allocation3] }
  0x4e   :  { %s136_s25 = scalar_lea.hbm %s1118_s2, %s996_s18  ;;  %s596_s28 = sshra.s32 %s129_s26, 4  ;;  %s597_s28 = int_to_ptr.hbm [resolvable:$true] %s596_s28 }
  0x4f   :  { %s598_s10 = scalar_lea.hbm %s597_s28, 1  ;;  %p601_p12 = scmp.lt.s32.totalorder %s597_s28, %s1118_s2 }
  0x50   :  { %p599_p11 = scmp.ne.s32.totalorder %s597_s28, %s598_s10  ;;  %p602_p13 = scmp.lt.s32.totalorder %s963_s16, %s598_s10 }
  0x52   :  { %p603_p0 = por %p602_p13, %p601_p12 }
  0x54   :  { %p604_p1 = pnand %p603_p0, %p599_p11 }
  0x56   :  { %607 = shalt.err (!%p604_p1)  }
  0x57   :  { %133 = dma.hbm_to_vmem [thread:$0]  %s129_s26, 16, %s131_s17, [#allocation3] }
  0x58   :  { %s145_s13 = sshll.u32 %s136_s25, 4  ;;  %s153_s27 = scalar_lea.hbm %s1118_s2, %s1001_s0  ;;  %s146_s13 = int_to_ptr.hbm [resolvable:$true] %s145_s13 }
  0x59   :  { %s162_s18 = sshll.u32 %s153_s27, 4  ;;  %s620_s19 = sshra.s32 %s146_s13, 4  ;;  %s621_s19 = int_to_ptr.hbm [resolvable:$true] %s620_s19  ;;  %s163_s18 = int_to_ptr.hbm [resolvable:$true] %s162_s18 }
  0x5a   :  { %s622_s6 = scalar_lea.hbm %s621_s19, 1  ;;  %p625_p3 = scmp.lt.s32.totalorder %s621_s19, %s1118_s2 }
  0x5b   :  { %p623_p2 = scmp.ne.s32.totalorder %s621_s19, %s622_s6  ;;  %p626_p4 = scmp.lt.s32.totalorder %s963_s16, %s622_s6 }
  0x5d   :  { %p627_p5 = por %p626_p4, %p625_p3 }
  0x5f   :  { %p628_p6 = pnand %p627_p5, %p623_p2 }
  0x61   :  { %631 = shalt.err (!%p628_p6)  }
  0x62   :  { %150 = dma.hbm_to_vmem [thread:$0]  %s146_s13, 16, %s148_s20, [#allocation3] }
  0x63   :  { %s901_s17 = smov [#allocation2 + $0x7]   ;;  %s410_s24 = sld [smem:[#allocation5 + $0x8]] }
  0x64   :  { %s164_s0 = sshll.u32 %s901_s17, 4  ;;  %s644_s1 = sshra.s32 %s163_s18, 4  ;;  %s165_s0 = int_to_ptr.vmem [resolvable:$true] %s164_s0  ;;  %s645_s1 = int_to_ptr.hbm [resolvable:$true] %s644_s1 }
  0x65   :  { %s646_s22 = scalar_lea.hbm %s645_s1, 1  ;;  %p649_p8 = scmp.lt.s32.totalorder %s645_s1, %s1118_s2 }
  0x66   :  { %p647_p7 = scmp.ne.s32.totalorder %s645_s1, %s646_s22  ;;  %p650_p9 = scmp.lt.s32.totalorder %s963_s16, %s646_s22 }
  0x68   :  { %p651_p10 = por %p650_p9, %p649_p8 }
  0x6a   :  { %p652_p11 = pnand %p651_p10, %p647_p7 }
  0x6c   :  { %655 = shalt.err (!%p652_p11)  }
  0x6d   :  { %167 = dma.hbm_to_vmem [thread:$0]  %s163_s18, 16, %s165_s0, [#allocation3] }
  0x6e   :  { %s902_s30 = smov [#allocation2 + $0x8]   ;;  %s411_s4 = sld [smem:[#allocation5 + $0x9]] }
  0x6f   :  { %s181_s20 = sshll.u32 %s902_s30, 4  ;;  %s903_s5 = smov [#allocation2 + $0x9]   ;;  %s182_s20 = int_to_ptr.vmem [resolvable:$true] %s181_s20 }
  0x70   :  { %s1038_s7 = sshll.u32 %s903_s5, 4  ;;  %s412_s8 = sld [smem:[#allocation5 + $0xa]]  ;;  %s199_s7 = int_to_ptr.vmem [resolvable:$true] %s1038_s7 }
  0x71   :  { %s170_s28 = scalar_lea.hbm %s1118_s2, %s410_s24  ;;  %s904_s11 = smov [#allocation2 + $0xa]  }
  0x72   :  { %s179_s10 = sshll.u32 %s170_s28, 4  ;;  %s1044_s12 = sshll.u32 %s904_s11, 4  ;;  %s180_s10 = int_to_ptr.hbm [resolvable:$true] %s179_s10  ;;  %s216_s12 = int_to_ptr.vmem [resolvable:$true] %s1044_s12 }
  0x73   :  { %s668_s13 = sshra.s32 %s180_s10, 4  ;;  %s669_s13 = int_to_ptr.hbm [resolvable:$true] %s668_s13 }
  0x74   :  { %s670_s14 = scalar_lea.hbm %s669_s13, 1  ;;  %p673_p13 = scmp.lt.s32.totalorder %s669_s13, %s1118_s2 }
  0x75   :  { %p671_p12 = scmp.ne.s32.totalorder %s669_s13, %s670_s14  ;;  %p674_p0 = scmp.lt.s32.totalorder %s963_s16, %s670_s14 }
  0x77   :  { %p675_p1 = por %p674_p0, %p673_p13 }
  0x79   :  { %p676_p2 = pnand %p675_p1, %p671_p12 }
  0x7b   :  { %679 = shalt.err (!%p676_p2)  }
  0x7c   :  { %184 = dma.hbm_to_vmem [thread:$0]  %s180_s10, 16, %s182_s20, [#allocation3] }
  0x7d   :  { %s187_s6 = scalar_lea.hbm %s1118_s2, %s411_s4  ;;  %s204_s0 = scalar_lea.hbm %s1118_s2, %s412_s8 }
  0x7e   :  { %s196_s21 = sshll.u32 %s187_s6, 4  ;;  %s213_s24 = sshll.u32 %s204_s0, 4  ;;  %s197_s21 = int_to_ptr.hbm [resolvable:$true] %s196_s21  ;;  %s214_s24 = int_to_ptr.hbm [resolvable:$true] %s213_s24 }
  0x7f   :  { %s692_s1 = sshra.s32 %s197_s21, 4  ;;  %s693_s1 = int_to_ptr.hbm [resolvable:$true] %s692_s1 }
  0x80   :  { %s694_s22 = scalar_lea.hbm %s693_s1, 1  ;;  %p697_p4 = scmp.lt.s32.totalorder %s693_s1, %s1118_s2 }
  0x81   :  { %p695_p3 = scmp.ne.s32.totalorder %s693_s1, %s694_s22  ;;  %p698_p5 = scmp.lt.s32.totalorder %s963_s16, %s694_s22 }
  0x83   :  { %p699_p6 = por %p698_p5, %p697_p4 }
  0x85   :  { %p700_p7 = pnand %p699_p6, %p695_p3 }
  0x87   :  { %703 = shalt.err (!%p700_p7)  }
  0x88   :  { %201 = dma.hbm_to_vmem [thread:$0]  %s197_s21, 16, %s199_s7, [#allocation3] }
  0x89   :  { %s413_s30 = sld [smem:[#allocation5 + $0xb]]  ;;  %s716_s20 = sshra.s32 %s214_s24, 4  ;;  %s717_s20 = int_to_ptr.hbm [resolvable:$true] %s716_s20 }
  0x8a   :  { %s718_s4 = scalar_lea.hbm %s717_s20, 1  ;;  %p721_p9 = scmp.lt.s32.totalorder %s717_s20, %s1118_s2 }
  0x8b   :  { %p719_p8 = scmp.ne.s32.totalorder %s717_s20, %s718_s4  ;;  %p722_p10 = scmp.lt.s32.totalorder %s963_s16, %s718_s4 }
  0x8d   :  { %p723_p11 = por %p722_p10, %p721_p9 }
  0x8f   :  { %p724_p12 = pnand %p723_p11, %p719_p8 }
  0x91   :  { %727 = shalt.err (!%p724_p12)  }
  0x92   :  { %218 = dma.hbm_to_vmem [thread:$0]  %s214_s24, 16, %s216_s12, [#allocation3] }
  0x93   :  { %s414_s9 = sld [smem:[#allocation5 + $0xc]]  ;;  %s905_s25 = smov [#allocation2 + $0xb]  }
  0x94   :  { %s232_s28 = sshll.u32 %s905_s25, 4  ;;  %s906_s7 = smov [#allocation2 + $0xc]   ;;  %s233_s28 = int_to_ptr.vmem [resolvable:$true] %s232_s28 }
  0x95   :  { %s1067_s10 = sshll.u32 %s906_s7, 4  ;;  %s1070_s11 = sld [smem:[#allocation5 + $0xd]]  ;;  %s250_s10 = int_to_ptr.vmem [resolvable:$true] %s1067_s10 }
  0x96   :  { %s221_s15 = scalar_lea.hbm %s1118_s2, %s413_s30  ;;  %s907_s18 = smov [#allocation2 + $0xd]  }
  0x97   :  { %s230_s27 = sshll.u32 %s221_s15, 4  ;;  %s1075_s19 = sshll.u32 %s907_s18, 4  ;;  %s231_s27 = int_to_ptr.hbm [resolvable:$true] %s230_s27  ;;  %s267_s19 = int_to_ptr.vmem [resolvable:$true] %s1075_s19 }
  0x98   :  { %s740_s23 = sshra.s32 %s231_s27, 4  ;;  %s741_s23 = int_to_ptr.hbm [resolvable:$true] %s740_s23 }
  0x99   :  { %s238_s21 = scalar_lea.hbm %s1118_s2, %s414_s9  ;;  %s742_s17 = scalar_lea.hbm %s741_s23, 1 }
  0x9a   :  { %p743_p13 = scmp.ne.s32.totalorder %s741_s23, %s742_s17  ;;  %p745_p0 = scmp.lt.s32.totalorder %s741_s23, %s1118_s2 }
  0x9b   :  { %p746_p1 = scmp.lt.s32.totalorder %s963_s16, %s742_s17 }
  0x9d   :  { %p747_p2 = por %p746_p1, %p745_p0 }
  0x9f   :  { %p748_p3 = pnand %p747_p2, %p743_p13 }
  0xa1   :  { %751 = shalt.err (!%p748_p3)  }
  0xa2   :  { %235 = dma.hbm_to_vmem [thread:$0]  %s231_s27, 16, %s233_s28, [#allocation3] }
  0xa3   :  { %s247_s1 = sshll.u32 %s238_s21, 4  ;;  %s255_s26 = scalar_lea.hbm %s1118_s2, %s1070_s11  ;;  %s248_s1 = int_to_ptr.hbm [resolvable:$true] %s247_s1 }
  0xa4   :  { %s764_s30 = sshra.s32 %s248_s1, 4  ;;  %s765_s30 = int_to_ptr.hbm [resolvable:$true] %s764_s30 }
  0xa5   :  { %s766_s20 = scalar_lea.hbm %s765_s30, 1  ;;  %p769_p5 = scmp.lt.s32.totalorder %s765_s30, %s1118_s2 }
  0xa6   :  { %p767_p4 = scmp.ne.s32.totalorder %s765_s30, %s766_s20  ;;  %p770_p6 = scmp.lt.s32.totalorder %s963_s16, %s766_s20 }
  0xa8   :  { %p771_p7 = por %p770_p6, %p769_p5 }
  0xaa   :  { %p772_p8 = pnand %p771_p7, %p767_p4 }
  0xac   :  { %775 = shalt.err (!%p772_p8)  }
  0xad   :  { %252 = dma.hbm_to_vmem [thread:$0]  %s248_s1, 16, %s250_s10, [#allocation3] }
  0xae   :  { %s264_s8 = sshll.u32 %s255_s26, 4  ;;  %s416_s9 = sld [smem:[#allocation5 + $0xe]]  ;;  %s265_s8 = int_to_ptr.hbm [resolvable:$true] %s264_s8 }
  0xaf   :  { %s788_s25 = sshra.s32 %s265_s8, 4  ;;  %s789_s25 = int_to_ptr.hbm [resolvable:$true] %s788_s25 }
  0xb0   :  { %s790_s28 = scalar_lea.hbm %s789_s25, 1  ;;  %p793_p10 = scmp.lt.s32.totalorder %s789_s25, %s1118_s2 }
  0xb1   :  { %p791_p9 = scmp.ne.s32.totalorder %s789_s25, %s790_s28  ;;  %p794_p11 = scmp.lt.s32.totalorder %s963_s16, %s790_s28 }
  0xb3   :  { %p795_p12 = por %p794_p11, %p793_p10 }
  0xb5   :  { %p796_p13 = pnand %p795_p12, %p791_p9 }
  0xb7   :  { %799 = shalt.err (!%p796_p13)  }
  0xb8   :  { %269 = dma.hbm_to_vmem [thread:$0]  %s265_s8, 16, %s267_s19, [#allocation3] }
  0xb9   :  { %s908_s13 = smov [#allocation2 + $0xe]   ;;  %s417_s10 = sld [smem:[#allocation5 + $0xf]] }
  0xba   :  { %s283_s14 = sshll.u32 %s908_s13, 4  ;;  %s272_s18 = scalar_lea.hbm %s1118_s2, %s416_s9  ;;  %s284_s14 = int_to_ptr.vmem [resolvable:$true] %s283_s14 }
  0xbb   :  { %s281_s12 = sshll.u32 %s272_s18, 4  ;;  %s909_s6 = smov [#allocation2 + $0xf]   ;;  %s282_s12 = int_to_ptr.hbm [resolvable:$true] %s281_s12 }
  0xbc   :  { %s300_s21 = sshll.u32 %s909_s6, 4  ;;  %s812_s23 = sshra.s32 %s282_s12, 4  ;;  %s813_s23 = int_to_ptr.hbm [resolvable:$true] %s812_s23  ;;  %s301_s21 = int_to_ptr.vmem [resolvable:$true] %s300_s21 }
  0xbd   :  { %s814_s17 = scalar_lea.hbm %s813_s23, 1  ;;  %p817_p1 = scmp.lt.s32.totalorder %s813_s23, %s1118_s2 }
  0xbe   :  { %p815_p0 = scmp.ne.s32.totalorder %s813_s23, %s814_s17  ;;  %p818_p2 = scmp.lt.s32.totalorder %s963_s16, %s814_s17 }
  0xc0   :  { %p819_p3 = por %p818_p2, %p817_p1 }
  0xc2   :  { %p820_p4 = pnand %p819_p3, %p815_p0 }
  0xc4   :  { %823 = shalt.err (!%p820_p4)  }
  0xc5   :  { %286 = dma.hbm_to_vmem [thread:$0]  %s282_s12, 16, %s284_s14, [#allocation3] }
  0xc6   :  { %s289_s22 = scalar_lea.hbm %s1118_s2, %s417_s10 }
  0xc7   :  { %s298_s29 = sshll.u32 %s289_s22, 4  ;;  %s299_s29 = int_to_ptr.hbm [resolvable:$true] %s298_s29 }
  0xc8   :  { %s836_s26 = sshra.s32 %s299_s29, 4  ;;  %s837_s26 = int_to_ptr.hbm [resolvable:$true] %s836_s26 }
  0xc9   :  { %s838_s30 = scalar_lea.hbm %s837_s26, 1  ;;  %p841_p6 = scmp.lt.s32.totalorder %s837_s26, %s1118_s2 }
  0xca   :  { %p839_p5 = scmp.ne.s32.totalorder %s837_s26, %s838_s30  ;;  %p842_p7 = scmp.lt.s32.totalorder %s963_s16, %s838_s30 }
  0xcc   :  { %p843_p8 = por %p842_p7, %p841_p6 }
  0xce   :  { %p844_p9 = pnand %p843_p8, %p839_p5 }
  0xd0   :  { %847 = shalt.err (!%p844_p9)  }
  0xd1   :  { %303 = dma.hbm_to_vmem [thread:$0]  %s299_s29, 16, %s301_s21, [#allocation3] }
  0xd2   :  { %888 = dma.done.wait [#allocation3], 256 }
  0xd3   :  { %889 = vsyncadd [#allocation3], 4294967040  ;;  %v353_v0 = vld [vmem:[#allocation2] sm:$0xff]  ;;  %v357_v1 = vld [vmem:[#allocation6] sm:$0xff]  ;;  %s910_s5 = smov [#allocation9]   ;;  %s368_s28 = sshll.u32 %s1119_s3, 4  ;;  %s369_s28 = int_to_ptr.hbm [resolvable:$true] %s368_s28 }
  0xd4   :  { %v354_v2 = vld [vmem:[#allocation2 + $0x8] sm:$0xff]  ;;  %s366_s8 = sshll.u32 %s910_s5, 4  ;;  %v355_v3 = vmul.f32 5.656854, %v353_v0  ;;  %s911_s2 = smov 128   ;;  %s367_s8 = int_to_ptr.vmem [resolvable:$true] %s366_s8 }
  0xd5   :  { %v356_v4 = vmul.f32 5.656854, %v354_v2  ;;  %s912_s16 = smov 8  }
  0xd6   :  { %v358_v5 = vadd.f32 %v357_v1, %v355_v3 }
  0xd7   :  { %v359_v6 = vadd.f32 %v357_v1, %v356_v4 }
  0xd8   :  { %360 = vst [vmem:[#allocation9] sm:$0xff] %v358_v5 }
  0xd9   :  { %361 = vst [vmem:[#allocation9 + $0x8] sm:$0xff] %v359_v6 }
  0xda   :  { %374 = dma.vmem_to_hbm [thread:$0]  %s367_s8, 256, %s369_s28, [#allocation8], %s911_s2, %s911_s2, %s912_s16  }
  0xdb   :  { %890 = dma.done.wait [#allocation8], 256  }
  0xdc   :  { %891 = vsyncadd [#allocation8], 4294967040 }
  0xdd   :  { %379 = vsyncpa [#allocation7], 1 }
  0xde   :  { %380 = vsyncpa [#allocation8], 1 }
  0xdf   :  { %381 = vsyncmov [#allocation3] }
  0xe2   :  { %s382_s7 = vpop.sfrf %381 }
  0xe3   :  { %p418_p10 = scmp.ne.s32.totalorder %s382_s7, 0 }
  0xe5   :  { %386 = shalt.err (%p418_p10)  }

</bundles_post_ra>
